<compile_context>
chip_gen: v7x
topology: tpu7x:2x2x1
jax: 0.10.0
libtpu: 0.0.40
codegen_flags: <defaults>
</compile_context>

<pallas_src>
import functools

import jax
import jax.numpy as jnp
from jax.experimental import pallas as pl
from jax.experimental.pallas import tpu as pltpu

LANE = 128


def _round_up(x, m):
    return (x + m - 1) // m * m


# ------------- fused 3x3 conv + bias (+ ReLU) (+ 2x2 max-pool) kernel ----------

def _conv_block_kernel(x_ref, w_ref, b_ref, o_ref, xpad_ref, patches_ref,
                       *pool_scratch, H, W, apply_relu, apply_pool):
    # x_ref:       (1, H, W, Cp)      bf16  channel-padded, NO spatial pad
    # w_ref:       (9*Cp, Coutp)      bf16  rows ordered as (kh, kw, cin)
    # b_ref:       (1, Coutp)         f32
    # o_ref:       (1, H*W, Coutp)          if not apply_pool
    #              (1, H//2, W//2, Coutp)   if apply_pool
    # xpad_ref:    VMEM (H+2, W+2, Cp) f32  in-kernel halo scratch
    # patches_ref: VMEM (H*W, 9*Cp)    bf16 im2col scratch
    # pool_scratch: optional VMEM (H//2, W, Coutp) f32 scratch for the pool
    cp = x_ref.shape[-1]

    # Build the 1-pixel zero halo in VMEM (replaces host-side jnp.pad + the
    # associated HBM round trip).  Re-zero every step so the border is valid
    # on every core when the batch axis is sharded across TensorCores.
    xpad_ref[...] = jnp.zeros_like(xpad_ref)
    xpad_ref[1:H + 1, 1:W + 1, :] = x_ref[0].astype(jnp.float32)

    # im2col: each of the 9 taps goes into a lane-aligned column block of the
    # patch matrix, then ONE deep matmul (K = 9*Cp) feeds the MXU.
    for kh in range(3):
        for kw in range(3):
            t = kh * 3 + kw
            patch = xpad_ref[kh:kh + H, kw:kw + W, :].reshape(H * W, cp)
            patches_ref[:, t * cp:(t + 1) * cp] = patch.astype(jnp.bfloat16)

    acc = jnp.dot(patches_ref[...], w_ref[...],
                  preferred_element_type=jnp.float32)     # (H*W, Coutp) f32
    acc = acc + b_ref[...]                                # fused bias
    if apply_relu:
        acc = jnp.maximum(acc, 0.0)                       # fused ReLU epilogue

    if apply_pool:                                        # fused 2x2 max-pool
        hpool_ref, = pool_scratch
        ho, wo = H // 2, W // 2
        cout = acc.shape[-1]
        a4 = acc.reshape(ho, 2, W, cout)                  # split H into row pairs
        hpool_ref[...] = jnp.maximum(a4[:, 0], a4[:, 1])  # pool along H
        pooled = jnp.maximum(hpool_ref[:, pl.ds(0, wo, 2), :],
                             hpool_ref[:, pl.ds(1, wo, 2), :])  # pool along W
        o_ref[0] = pooled.astype(o_ref.dtype)
    else:
        o_ref[0] = acc.astype(o_ref.dtype)


def conv3x3_block(x, w, b, *, apply_relu, apply_pool):
    """x: (N, H, W, Cp) bf16 channel-padded NHWC; w: (3,3,Cin,Cout) f32; b: (Cout,) f32.
    Returns (N, H', W', Coutp) bf16 with Coutp = round_up(Cout, 128)."""
    N, H, W, Cp = x.shape
    Cin, Cout = w.shape[2], w.shape[3]
    Coutp = _round_up(Cout, LANE)
    if apply_pool:
        assert H % 2 == 0 and W % 2 == 0

    # Zero-pad channels of weights / bias; pack weights for the im2col matmul.
    wp = jnp.pad(w, ((0, 0), (0, 0), (0, Cp - Cin), (0, Coutp - Cout)))
    wp = wp.reshape(9 * Cp, Coutp).astype(jnp.bfloat16)
    bp = jnp.pad(b, (0, Coutp - Cout)).reshape(1, Coutp).astype(jnp.float32)

    scratch = [pltpu.VMEM((H + 2, W + 2, Cp), jnp.float32),      # halo
               pltpu.VMEM((H * W, 9 * Cp), jnp.bfloat16)]        # im2col
    if apply_pool:
        Ho, Wo = H // 2, W // 2
        out_shape = jax.ShapeDtypeStruct((N, Ho, Wo, Coutp), jnp.bfloat16)
        out_spec = pl.BlockSpec((1, Ho, Wo, Coutp), lambda n: (n, 0, 0, 0))
        scratch.append(pltpu.VMEM((Ho, W, Coutp), jnp.float32))
    else:
        out_shape = jax.ShapeDtypeStruct((N, H * W, Coutp), jnp.bfloat16)
        out_spec = pl.BlockSpec((1, H * W, Coutp), lambda n: (n, 0, 0))

    out = pl.pallas_call(
        functools.partial(_conv_block_kernel, H=H, W=W,
                          apply_relu=apply_relu, apply_pool=apply_pool),
        out_shape=out_shape,
        grid=(N,),
        in_specs=[
            pl.BlockSpec((1, H, W, Cp), lambda n: (n, 0, 0, 0)),
            pl.BlockSpec((9 * Cp, Coutp), lambda n: (0, 0)),
            pl.BlockSpec((1, Coutp), lambda n: (0, 0)),
        ],
        out_specs=out_spec,
        scratch_shapes=scratch,
        compiler_params=pltpu.CompilerParams(dimension_semantics=("parallel",)),
    )(x, wp, bp)

    if apply_pool:
        return out
    # Same row-major / (8,128)-tile layout: this reshape is a free bitcast.
    return out.reshape(N, H, W, Coutp)


# ------------------------- standalone 2x2 max-pool ------------------------------
# Used only when the activation right before the pool is tapped (so the pool
# cannot be fused into the preceding conv kernel).

def _maxpool2_kernel(x_ref, o_ref, hpool_ref):
    # x_ref: (1, H, W, C) bf16 ; o_ref: (1, H//2, W//2, C) bf16
    # hpool_ref: VMEM (H//2, W, C) f32
    H, W, C = x_ref.shape[1], x_ref.shape[2], x_ref.shape[3]
    ho, wo = H // 2, W // 2
    x = x_ref[0].astype(jnp.float32).reshape(ho, 2, W, C)   # H row pairs
    hpool_ref[...] = jnp.maximum(x[:, 0], x[:, 1])          # pool along H
    pooled = jnp.maximum(hpool_ref[:, pl.ds(0, wo, 2), :],
                         hpool_ref[:, pl.ds(1, wo, 2), :])  # pool along W
    o_ref[0] = pooled.astype(o_ref.dtype)


def maxpool2x2(x):
    N, H, W, C = x.shape
    assert H % 2 == 0 and W % 2 == 0  # PyTorch MaxPool2d(2) floors odd dims
    Ho, Wo = H // 2, W // 2
    return pl.pallas_call(
        _maxpool2_kernel,
        out_shape=jax.ShapeDtypeStruct((N, Ho, Wo, C), x.dtype),
        grid=(N,),
        in_specs=[pl.BlockSpec((1, H, W, C), lambda n: (n, 0, 0, 0))],
        out_specs=pl.BlockSpec((1, Ho, Wo, C), lambda n: (n, 0, 0, 0)),
        scratch_shapes=[pltpu.VMEM((Ho, W, C), jnp.float32)],
        compiler_params=pltpu.CompilerParams(dimension_semantics=("parallel",)),
    )(x)


# ---------------------------- standalone ReLU -----------------------------------
# Only needed if a conv index itself is tapped (pre-activation); not exercised
# by the demo config where taps are the ReLU indices (the common VGG usage).

def _relu_kernel(x_ref, o_ref):
    o_ref[...] = jnp.maximum(x_ref[...], 0.0).astype(o_ref.dtype)


def relu(x):
    N, H, W, C = x.shape
    return pl.pallas_call(
        _relu_kernel,
        out_shape=jax.ShapeDtypeStruct(x.shape, x.dtype),
        grid=(N,),
        in_specs=[pl.BlockSpec((1, H, W, C), lambda n: (n, 0, 0, 0))],
        out_specs=pl.BlockSpec((1, H, W, C), lambda n: (n, 0, 0, 0)),
        compiler_params=pltpu.CompilerParams(dimension_semantics=("parallel",)),
    )(x)


# -------------------------- VGG_Activations forward -----------------------------

def vgg_activations_forward(params, layers, idx_list, x_nchw):
    """Mirror of VGG_Activations.forward. Public I/O is NCHW float32 like the
    PyTorch module; internally NHWC bf16 with channels zero-padded to 128."""
    idx_set = set(idx_list)
    n_layers = len(layers)

    x = jnp.transpose(x_nchw, (0, 2, 3, 1)).astype(jnp.bfloat16)   # NCHW -> NHWC
    c_real = x.shape[-1]
    x = jnp.pad(x, ((0, 0), (0, 0), (0, 0),
                    (0, _round_up(c_real, LANE) - c_real)))

    taps = []
    ii = 0
    while ii < n_layers:
        kind = layers[ii][0]
        if kind == "conv":
            w, b = params[layers[ii][1]]
            # Fuse the following ReLU (and the following pool) into the conv
            # kernel whenever the intermediate activations are not tapped.
            fuse_relu = (ii + 1 < n_layers and layers[ii + 1][0] == "relu"
                         and ii not in idx_set)
            fuse_pool = (fuse_relu and ii + 2 < n_layers
                         and layers[ii + 2][0] == "maxpool"
                         and (ii + 1) not in idx_set)
            x = conv3x3_block(x, w, b, apply_relu=fuse_relu,
                              apply_pool=fuse_pool)
            c_real = w.shape[-1]
            last = ii + 2 if fuse_pool else (ii + 1 if fuse_relu else ii)
        elif kind == "relu":
            x = relu(x)
            last = ii
        elif kind == "maxpool":
            x = maxpool2x2(x)
            last = ii
        else:
            raise ValueError(f"unknown layer kind: {kind}")

        # By construction only the final index of a fused group can be tapped.
        if last in idx_set:
            taps.append((last, x, c_real))
        ii = last + 1

    results = []
    for _, act, c in sorted(taps, key=lambda t: t[0]):
        results.append(
            jnp.transpose(act[..., :c].astype(jnp.float32), (0, 3, 1, 2)))
    return results


# ------------------------------ plain-JAX reference ------------------------------

def ref_forward(params, layers, idx_list, x_nchw):
    """Reference mirroring the kernels' numerics: bf16 conv operands, float32
    accumulation, bf16 rounding of the values observed at the tap points."""
    x = jnp.transpose(x_nchw, (0, 2, 3, 1)).astype(jnp.bfloat16).astype(jnp.float32)
    results = []
    for ii, layer in enumerate(layers):
        if layer[0] == "conv":
            w, b = params[layer[1]]
            x = jax.lax.conv_general_dilated(
                x.astype(jnp.bfloat16), w.astype(jnp.bfloat16), (1, 1), "SAME",
                dimension_numbers=("NHWC", "HWIO", "NHWC"),
                preferred_element_type=jnp.float32) + b
        elif layer[0] == "relu":
            x = jnp.maximum(x, 0.0)
        else:  # maxpool
            x = jax.lax.reduce_window(x, -jnp.inf, jax.lax.max,
                                      (1, 2, 2, 1), (1, 2, 2, 1), "VALID")
        if ii in idx_list:
            results.append(jnp.transpose(
                x.astype(jnp.bfloat16).astype(jnp.float32), (0, 3, 1, 2)))
    return results


if __name__ == "__main__":
    key = jax.random.PRNGKey(0)
    N, C0, H, W = 2, 4, 16, 16
    k_x, k0, k2, k5, k8 = jax.random.split(key, 5)
    x_nchw = jax.random.normal(k_x, (N, C0, H, W), jnp.float32)

    def init_conv(k, cin, cout):
        kw_, kb_ = jax.random.split(k)
        w = jax.random.normal(kw_, (3, 3, cin, cout), jnp.float32)
        w = w * (1.0 / (3 * 3 * cin) ** 0.5)
        b = jax.random.normal(kb_, (cout,), jnp.float32) * 0.01
        return w, b

    # Small deterministic VGG-like `features` list (module index -> layer):
    #   0: Conv(4->8)   1: ReLU  2: Conv(8->8)   3: ReLU  4: MaxPool
    #   5: Conv(8->16)  6: ReLU  7: MaxPool
    #   8: Conv(16->16) 9: ReLU
    params = {
        "conv0": init_conv(k0, 4, 8),
        "conv2": init_conv(k2, 8, 8),
        "conv5": init_conv(k5, 8, 16),
        "conv8": init_conv(k8, 16, 16),
    }
    layers = [("conv", "conv0"), ("relu",), ("conv", "conv2"), ("relu",),
              ("maxpool",), ("conv", "conv5"), ("relu",), ("maxpool",),
              ("conv", "conv8"), ("relu",)]
    # Tap post-ReLU activations (VGG perceptual-loss style). Tapping index 3
    # forces the standalone pool kernel at index 4; index 6 being untapped lets
    # conv5+relu6+pool7 fuse into a single kernel, so both paths are exercised.
    idx_list = (1, 3, 9)

    results = vgg_activations_forward(params, layers, idx_list, x_nchw)
    results = jax.block_until_ready(results)

    expected = ref_forward(params, layers, idx_list, x_nchw)
    assert len(results) == len(expected)
    for got, want in zip(results, expected):
        assert got.shape == want.shape, (got.shape, want.shape)
        assert got.dtype == want.dtype, (got.dtype, want.dtype)
        assert jnp.allclose(got, want, atol=2e-2, rtol=2e-2), \
            float(jnp.max(jnp.abs(got - want)))

    print("KERNEL_OK")
</pallas_src>

<mosaic_0001>
module attributes {stable_mosaic.version = 11 : i64} {
  func.func @_conv_block_kernel(%arg0: i32, %arg1: memref<1x16x16x128xbf16, #tpu.memory_space<vmem>>, %arg2: memref<1152x128xbf16, #tpu.memory_space<vmem>>, %arg3: memref<1x128xf32, #tpu.memory_space<vmem>>, %arg4: memref<1x256x128xbf16, #tpu.memory_space<vmem>>, %arg5: memref<18x18x128xf32, #tpu.memory_space<vmem>>, %arg6: memref<256x1152xbf16, #tpu.memory_space<vmem>>) attributes {dimension_semantics = [#tpu.dimension_semantics<parallel>], iteration_bounds = array<i64: 2>, scalar_prefetch = 0 : i64, scratch_operands = 2 : i64, tpu.core_type = #tpu.core_type<tc>, window_params = [{transform_indices = @transform_0, window_bounds = array<i64: 1, 16, 16, 128>}, {pipeline_mode = #tpu.pipeline_mode<synchronous>, transform_indices = @transform_1, window_bounds = array<i64: 1152, 128>}, {pipeline_mode = #tpu.pipeline_mode<synchronous>, transform_indices = @transform_2, window_bounds = array<i64: 1, 128>}, {transform_indices = @transform_3, window_bounds = array<i64: 1, 256, 128>}]} {
    %cst = arith.constant 0.000000e+00 : f32
    %0 = vector.broadcast %cst : f32 to vector<18x18x128xf32>
    %c0 = arith.constant 0 : index
    %c0_0 = arith.constant 0 : index
    %c0_1 = arith.constant 0 : index
    %1 = vector.load %arg5[%c0, %c0_0, %c0_1] : memref<18x18x128xf32, #tpu.memory_space<vmem>>, vector<18x18x128xf32>
    tpu.vector_store %arg5[%c0, %c0_0, %c0_1], %0 {strides = array<i32>} : memref<18x18x128xf32, #tpu.memory_space<vmem>>, vector<18x18x128xf32>,
    %c0_2 = arith.constant 0 : index
    %c0_3 = arith.constant 0 : index
    %c0_4 = arith.constant 0 : index
    %c0_5 = arith.constant 0 : index
    %2 = vector.load %arg1[%c0_2, %c0_3, %c0_4, %c0_5] : memref<1x16x16x128xbf16, #tpu.memory_space<vmem>>, vector<1x16x16x128xbf16>
    %3 = vector.shape_cast %2 : vector<1x16x16x128xbf16> to vector<16x16x128xbf16>
    %4 = arith.extf %3 : vector<16x16x128xbf16> to vector<16x16x128xf32>
    %c1 = arith.constant 1 : index
    %c1_6 = arith.constant 1 : index
    %c0_7 = arith.constant 0 : index
    %5 = vector.load %arg5[%c1, %c1_6, %c0_7] : memref<18x18x128xf32, #tpu.memory_space<vmem>>, vector<16x16x128xf32>
    tpu.vector_store %arg5[%c1, %c1_6, %c0_7], %4 {strides = array<i32>} : memref<18x18x128xf32, #tpu.memory_space<vmem>>, vector<16x16x128xf32>,
    %c0_8 = arith.constant 0 : index
    %c0_9 = arith.constant 0 : index
    %c0_10 = arith.constant 0 : index
    %6 = vector.load %arg5[%c0_8, %c0_9, %c0_10] : memref<18x18x128xf32, #tpu.memory_space<vmem>>, vector<16x16x128xf32>
    %7 = vector.shape_cast %6 : vector<16x16x128xf32> to vector<256x128xf32>
    %8 = arith.truncf %7 : vector<256x128xf32> to vector<256x128xbf16>
    %c0_11 = arith.constant 0 : index
    %c0_12 = arith.constant 0 : index
    %9 = vector.load %arg6[%c0_11, %c0_12] : memref<256x1152xbf16, #tpu.memory_space<vmem>>, vector<256x128xbf16>
    tpu.vector_store %arg6[%c0_11, %c0_12], %8 {strides = array<i32>} : memref<256x1152xbf16, #tpu.memory_space<vmem>>, vector<256x128xbf16>,
    %c0_13 = arith.constant 0 : index
    %c1_14 = arith.constant 1 : index
    %c0_15 = arith.constant 0 : index
    %10 = vector.load %arg5[%c0_13, %c1_14, %c0_15] : memref<18x18x128xf32, #tpu.memory_space<vmem>>, vector<16x16x128xf32>
    %11 = vector.shape_cast %10 : vector<16x16x128xf32> to vector<256x128xf32>
    %12 = arith.truncf %11 : vector<256x128xf32> to vector<256x128xbf16>
    %c0_16 = arith.constant 0 : index
    %c128 = arith.constant 128 : index
    %13 = vector.load %arg6[%c0_16, %c128] : memref<256x1152xbf16, #tpu.memory_space<vmem>>, vector<256x128xbf16>
    tpu.vector_store %arg6[%c0_16, %c128], %12 {strides = array<i32>} : memref<256x1152xbf16, #tpu.memory_space<vmem>>, vector<256x128xbf16>,
    %c0_17 = arith.constant 0 : index
    %c2 = arith.constant 2 : index
    %c0_18 = arith.constant 0 : index
    %14 = vector.load %arg5[%c0_17, %c2, %c0_18] : memref<18x18x128xf32, #tpu.memory_space<vmem>>, vector<16x16x128xf32>
    %15 = vector.shape_cast %14 : vector<16x16x128xf32> to vector<256x128xf32>
    %16 = arith.truncf %15 : vector<256x128xf32> to vector<256x128xbf16>
    %c0_19 = arith.constant 0 : index
    %c256 = arith.constant 256 : index
    %17 = vector.load %arg6[%c0_19, %c256] : memref<256x1152xbf16, #tpu.memory_space<vmem>>, vector<256x128xbf16>
    tpu.vector_store %arg6[%c0_19, %c256], %16 {strides = array<i32>} : memref<256x1152xbf16, #tpu.memory_space<vmem>>, vector<256x128xbf16>,
    %c1_20 = arith.constant 1 : index
    %c0_21 = arith.constant 0 : index
    %c0_22 = arith.constant 0 : index
    %18 = vector.load %arg5[%c1_20, %c0_21, %c0_22] : memref<18x18x128xf32, #tpu.memory_space<vmem>>, vector<16x16x128xf32>
    %19 = vector.shape_cast %18 : vector<16x16x128xf32> to vector<256x128xf32>
    %20 = arith.truncf %19 : vector<256x128xf32> to vector<256x128xbf16>
    %c0_23 = arith.constant 0 : index
    %c384 = arith.constant 384 : index
    %21 = vector.load %arg6[%c0_23, %c384] : memref<256x1152xbf16, #tpu.memory_space<vmem>>, vector<256x128xbf16>
    tpu.vector_store %arg6[%c0_23, %c384], %20 {strides = array<i32>} : memref<256x1152xbf16, #tpu.memory_space<vmem>>, vector<256x128xbf16>,
    %c1_24 = arith.constant 1 : index
    %c1_25 = arith.constant 1 : index
    %c0_26 = arith.constant 0 : index
    %22 = vector.load %arg5[%c1_24, %c1_25, %c0_26] : memref<18x18x128xf32, #tpu.memory_space<vmem>>, vector<16x16x128xf32>
    %23 = vector.shape_cast %22 : vector<16x16x128xf32> to vector<256x128xf32>
    %24 = arith.truncf %23 : vector<256x128xf32> to vector<256x128xbf16>
    %c0_27 = arith.constant 0 : index
    %c512 = arith.constant 512 : index
    %25 = vector.load %arg6[%c0_27, %c512] : memref<256x1152xbf16, #tpu.memory_space<vmem>>, vector<256x128xbf16>
    tpu.vector_store %arg6[%c0_27, %c512], %24 {strides = array<i32>} : memref<256x1152xbf16, #tpu.memory_space<vmem>>, vector<256x128xbf16>,
    %c1_28 = arith.constant 1 : index
    %c2_29 = arith.constant 2 : index
    %c0_30 = arith.constant 0 : index
    %26 = vector.load %arg5[%c1_28, %c2_29, %c0_30] : memref<18x18x128xf32, #tpu.memory_space<vmem>>, vector<16x16x128xf32>
    %27 = vector.shape_cast %26 : vector<16x16x128xf32> to vector<256x128xf32>
    %28 = arith.truncf %27 : vector<256x128xf32> to vector<256x128xbf16>
    %c0_31 = arith.constant 0 : index
    %c640 = arith.constant 640 : index
    %29 = vector.load %arg6[%c0_31, %c640] : memref<256x1152xbf16, #tpu.memory_space<vmem>>, vector<256x128xbf16>
    tpu.vector_store %arg6[%c0_31, %c640], %28 {strides = array<i32>} : memref<256x1152xbf16, #tpu.memory_space<vmem>>, vector<256x128xbf16>,
    %c2_32 = arith.constant 2 : index
    %c0_33 = arith.constant 0 : index
    %c0_34 = arith.constant 0 : index
    %30 = vector.load %arg5[%c2_32, %c0_33, %c0_34] : memref<18x18x128xf32, #tpu.memory_space<vmem>>, vector<16x16x128xf32>
    %31 = vector.shape_cast %30 : vector<16x16x128xf32> to vector<256x128xf32>
    %32 = arith.truncf %31 : vector<256x128xf32> to vector<256x128xbf16>
    %c0_35 = arith.constant 0 : index
    %c768 = arith.constant 768 : index
    %33 = vector.load %arg6[%c0_35, %c768] : memref<256x1152xbf16, #tpu.memory_space<vmem>>, vector<256x128xbf16>
    tpu.vector_store %arg6[%c0_35, %c768], %32 {strides = array<i32>} : memref<256x1152xbf16, #tpu.memory_space<vmem>>, vector<256x128xbf16>,
    %c2_36 = arith.constant 2 : index
    %c1_37 = arith.constant 1 : index
    %c0_38 = arith.constant 0 : index
    %34 = vector.load %arg5[%c2_36, %c1_37, %c0_38] : memref<18x18x128xf32, #tpu.memory_space<vmem>>, vector<16x16x128xf32>
    %35 = vector.shape_cast %34 : vector<16x16x128xf32> to vector<256x128xf32>
    %36 = arith.truncf %35 : vector<256x128xf32> to vector<256x128xbf16>
    %c0_39 = arith.constant 0 : index
    %c896 = arith.constant 896 : index
    %37 = vector.load %arg6[%c0_39, %c896] : memref<256x1152xbf16, #tpu.memory_space<vmem>>, vector<256x128xbf16>
    tpu.vector_store %arg6[%c0_39, %c896], %36 {strides = array<i32>} : memref<256x1152xbf16, #tpu.memory_space<vmem>>, vector<256x128xbf16>,
    %c2_40 = arith.constant 2 : index
    %c2_41 = arith.constant 2 : index
    %c0_42 = arith.constant 0 : index
    %38 = vector.load %arg5[%c2_40, %c2_41, %c0_42] : memref<18x18x128xf32, #tpu.memory_space<vmem>>, vector<16x16x128xf32>
    %39 = vector.shape_cast %38 : vector<16x16x128xf32> to vector<256x128xf32>
    %40 = arith.truncf %39 : vector<256x128xf32> to vector<256x128xbf16>
    %c0_43 = arith.constant 0 : index
    %c1024 = arith.constant 1024 : index
    %41 = vector.load %arg6[%c0_43, %c1024] : memref<256x1152xbf16, #tpu.memory_space<vmem>>, vector<256x128xbf16>
    tpu.vector_store %arg6[%c0_43, %c1024], %40 {strides = array<i32>} : memref<256x1152xbf16, #tpu.memory_space<vmem>>, vector<256x128xbf16>,
    %c0_44 = arith.constant 0 : index
    %c0_45 = arith.constant 0 : index
    %42 = vector.load %arg6[%c0_44, %c0_45] : memref<256x1152xbf16, #tpu.memory_space<vmem>>, vector<256x1152xbf16>
    %c0_46 = arith.constant 0 : index
    %c0_47 = arith.constant 0 : index
    %43 = vector.load %arg2[%c0_46, %c0_47] : memref<1152x128xbf16, #tpu.memory_space<vmem>>, vector<1152x128xbf16>
    %cst_48 = arith.constant dense<0.000000e+00> : vector<256x128xf32>
    %44 = tpu.matmul %42, %43, %cst_48 {dimension_numbers = #tpu.dot_dimension_numbers<[1], [0], [0], [1], [0, 0, 1, 1], [], []>} : vector<256x1152xbf16>, vector<1152x128xbf16>, vector<256x128xf32> -> vector<256x128xf32>
    %c0_49 = arith.constant 0 : index
    %c0_50 = arith.constant 0 : index
    %45 = vector.load %arg3[%c0_49, %c0_50] : memref<1x128xf32, #tpu.memory_space<vmem>>, vector<1x128xf32>
    %46 = vector.broadcast %45 : vector<1x128xf32> to vector<256x128xf32>
    %47 = arith.addf %44, %46 : vector<256x128xf32>
    %cst_51 = arith.constant 0.000000e+00 : f32
    %48 = vector.broadcast %cst_51 : f32 to vector<256x128xf32>
    %49 = arith.maximumf %47, %48 : vector<256x128xf32>
    %50 = arith.truncf %49 : vector<256x128xf32> to vector<256x128xbf16>
    %c0_52 = arith.constant 0 : index
    %c0_53 = arith.constant 0 : index
    %c0_54 = arith.constant 0 : index
    %51 = vector.load %arg4[%c0_52, %c0_53, %c0_54] : memref<1x256x128xbf16, #tpu.memory_space<vmem>>, vector<1x256x128xbf16>
    %52 = vector.shape_cast %51 : vector<1x256x128xbf16> to vector<256x128xbf16>
    %53 = vector.shape_cast %50 : vector<256x128xbf16> to vector<1x256x128xbf16>
    tpu.vector_store %arg4[%c0_52, %c0_53, %c0_54], %53 {strides = array<i32>} : memref<1x256x128xbf16, #tpu.memory_space<vmem>>, vector<1x256x128xbf16>,
    return
  }
  func.func @transform_0(%arg0: i32) -> (i32, i32, i32, i32) {
    %c0_i32 = arith.constant 0 : i32
    %c0_i32_0 = arith.constant 0 : i32
    %c0_i32_1 = arith.constant 0 : i32
    %c0_i32_2 = arith.constant 0 : i32
    return %arg0, %c0_i32, %c0_i32_0, %c0_i32_1 : i32, i32, i32, i32
  }
  func.func @transform_1(%arg0: i32) -> (i32, i32) {
    %c0_i32 = arith.constant 0 : i32
    %c0_i32_0 = arith.constant 0 : i32
    %c0_i32_1 = arith.constant 0 : i32
    return %c0_i32, %c0_i32_0 : i32, i32
  }
  func.func @transform_2(%arg0: i32) -> (i32, i32) {
    %c0_i32 = arith.constant 0 : i32
    %c0_i32_0 = arith.constant 0 : i32
    %c0_i32_1 = arith.constant 0 : i32
    return %c0_i32, %c0_i32_0 : i32, i32
  }
  func.func @transform_3(%arg0: i32) -> (i32, i32, i32) {
    %c0_i32 = arith.constant 0 : i32
    %c0_i32_0 = arith.constant 0 : i32
    %c0_i32_1 = arith.constant 0 : i32
    return %arg0, %c0_i32, %c0_i32_0 : i32, i32, i32
  }
}

</mosaic_0001>

<bundles_post_ra>
// kernel: tpu_custom_call.1
= control target key start
LH: loop header
LB: loop body
LE: loop exit
PB: predicated region body
PF: predicated region fallthrough
CT: control target
= control target key end

     0   :  { %8 = vsyncpa [#allocation5], 0  ;;  %s4799_s0 = inlined_call_operand.hbm [shape: bf16[2,16,16,128], index: 0, kind: input, shape index: {}]   ;;  %s4800_s1 = inlined_call_operand.hbm [shape: bf16[1152,128], index: 1, kind: input, shape index: {}]   ;;  %s4801_s2 = inlined_call_operand.vmem [shape: f32[1,128], index: 2, kind: input, shape index: {}]   ;;  %s4802_s3 = inlined_call_operand.hbm [shape: bf16[2,256,128], index: 3, kind: output, shape index: {}]  }
   0x1   :  { %10 = vsyncpa [#allocation5 + $0x1], 0 }
   0x2   :  { %11 = vsyncpa [#allocation8], 0 }
   0x3   :  { %12 = vsyncpa [#allocation6], 0 }
   0x4   :  { %14 = vsyncpa [#allocation6 + $0x1], 0  ;;  %s3929_s12 = smov 0   ;;  %s3931_s13 = smov 0  }
   0x5   :  { %s3933_s14 = smov 0   ;;  %s3935_s15 = smov 0  }
   0x6 LB: > { %s3950_s16 = sadd.s32 4294967295, %s3898_s15   ;;  %s2754_s17 = sadd.s32 4294967294, %s3898_s15   ;;  %s3898_s15 = sphi %s3935_s15, %s4822_s15   ;;  %s3894_s14 = sphi %s3933_s14, %s4821_s14   ;;  %s3890_s13 = sphi %s3931_s13, %s4820_s13   ;;  %s3886_s12 = sphi %s3929_s12, %s4819_s12  }
   0x7   : > { %p40_p0 = scmp.ne.s32.totalorder %s3890_s13, %s3886_s12  ;;  %p4803_p1 = scmp.eq.s32.totalorder %s3950_s16, 0 }
   0x8   : > { %p112_p3 = scmp.eq.s32.totalorder %s2754_s17, 1  ;;  %p2755_p5 = scmp.ge.s32.totalorder %s3898_s15, 1 }
   0x9   : > { %p3959_p4 = por %p4803_p1, %p40_p0  ;;  %p119_p7 = scmp.lt.s32.totalorder %s3898_s15, 3 }
   0xa   : > { %p3964_p6 = por %p112_p3, %p40_p0  ;;  %s3900_s21 = smov [#allocation7]  }
   0xb   : > { %s4806_s18 = scalar_select %p3959_p4, 1, 0 }
   0xc   : > { %s4807_s19 = scalar_select %p3964_p6, 1, 0 }
   0xd   : > { %p3969_p8 = pnand %p2755_p5, %p119_p7  ;;  %s131_s22 = sshll.u32 %s3900_s21, 4  ;;  %s3973_s22 = int_to_ptr.vmem [resolvable:$true] %s131_s22 }
   0xe   : > { %s3985_s24 = sadd.s32 1, %s3898_s15   ;;  %s27_s25 = sadd.s32 1, %s3894_s14 }
   0xf   : > { %s4808_s20 = scalar_select %p3969_p8, 1, 0 }
  0x10   : > { %p3627_p9 = pneg %p3969_p8  ;;  %s24_s26 = ssub.s32 %s3898_s15, %s3985_s24 }
  0x11   : > { %s3770_s29 = scalar_lea.hbm %s4800_s1, 9216 }
  0x12   : > { %p3980_p11 = pnand %p3627_p9, %p4803_p1  ;;  %p3771_p12 = scmp.ne.s32.totalorder %s4800_s1, %s3770_s29 }
  0x13   : > { %p3777_p5 = scmp.lt.u32.totalorder %s3770_s29, %s4800_s1 }
  0x14   : > { %p3772_p13 = pneg %p3980_p11 }
  0x16   : > { %p3773_p0 = pnand %p3772_p13, %p3771_p12 }
  0x18   : > { %p3774_p3 = pneg %p3773_p0 }
  0x1a   : > { %p3779_p7 = pnand %p3777_p5, %p3774_p3 }
  0x1c   : > { %3782 = shalt.err (!%p3779_p7)
}
  0x1d   : > { %s3783_s7 = scalar_lea.vmem %s3973_s22, 9216  ;;  %p3791_p2 = scmp.lt.s32.totalorder %s3973_s22, %s3973_s22 }
  0x1e   : > { %p3784_p9 = scmp.ne.s32.totalorder %s3973_s22, %s3783_s7  ;;  %p3792_p6 = scmp.lt.s32.totalorder %s3783_s7, %s3783_s7 }
  0x20   : > { %p3786_p10 = pnand %p3784_p9, %p3772_p13  ;;  %p3793_p4 = por %p3792_p6, %p3791_p2 }
  0x22   : > { %p3787_p1 = pneg %p3786_p10 }
  0x24   : > { %p3794_p8 = pnand %p3793_p4, %p3787_p1 }
  0x26   : > { %3797 = shalt.err (!%p3794_p8)
}
  0x27   : > { %s3901_s8 = smov 64   ;;  %s3902_s9 = smov 4  }
  0x28   : > { %3630 = dma.hbm_to_vmem [thread:$0]  (!%p3980_p11), %s4800_s1, 9216, %s3973_s22, [#allocation8], %s3901_s8, %s3901_s8, %s3902_s9  }
  0x29   : > { %p25_p1 = scmp.eq.s32.totalorder %s24_s26, 0  ;;  %p34_p2 = scmp.ne.s32.totalorder %s3894_s14, %s3890_s13 }
  0x2a   : > { %p35_p4 = scmp.eq.s32.totalorder %s3898_s15, 0  ;;  %p3640_p6 = scmp.lt.s32.totalorder %s3898_s15, 2 }
  0x2b   : > { %s4019_s17 = scalar_select %p25_p1, %s3894_s14, %s27_s25  }
  0x2c   : > { %p36_p8 = por %p35_p4, %p34_p2  ;;  %p4810_p10 = scmp.eq.s32.totalorder %s3950_s16, 1 }
  0x2d   : > { %s148_s23 = sand.u32 1, %s3894_s14   ;;  %s2875_s27 = sshll.u32 %s3898_s15, 11 }
  0x2e   : > { %p4023_p12 = por %p4810_p10, %p34_p2  ;;  %s2758_s28 = sshll.u32 %s148_s23, 7 }
  0x2f   : > { %s4032_s4 = scalar_lea.hbm %s4799_s0, %s2875_s27  ;;  %s152_s22 = scalar_lea.vmem [#allocation4], %s2758_s28 }
  0x30   : > { %s159_s25 = sshll.u32 %s152_s22, 4  ;;  %p4034_p11 = pnand %p3640_p6, %p36_p8  ;;  %s4038_s25 = int_to_ptr.vmem [resolvable:$true] %s159_s25 }
  0x31   : > { %s4040_s5 = scalar_lea.sflag [#allocation5], %s148_s23  ;;  %s3798_s6 = scalar_lea.hbm %s4032_s4, 2048 }
  0x32   : > { %p3799_p13 = scmp.ne.s32.totalorder %s4032_s4, %s3798_s6  ;;  %p3800_p0 = pneg %p4034_p11 }
  0x33   : > { %s3803_s11 = scalar_lea.hbm %s4799_s0, 4096  ;;  %p3804_p7 = scmp.lt.u32.totalorder %s4032_s4, %s4799_s0 }
  0x34   : > { %p3801_p3 = pnand %p3800_p0, %p3799_p13  ;;  %p3805_p9 = scmp.lt.u32.totalorder %s3803_s11, %s3798_s6 }
  0x35   : > { %p3807_p2 = scmp.lt.u32.totalorder %s3798_s6, %s4032_s4 }
  0x36   : > { %p3802_p5 = pneg %p3801_p3  ;;  %p3806_p1 = por %p3805_p9, %p3804_p7 }
  0x38   : > { %p3808_p4 = por %p3807_p2, %p3806_p1 }
  0x3a   : > { %p3809_p6 = pnand %p3808_p4, %p3802_p5 }
  0x3c   : > { %3812 = shalt.err (!%p3809_p6)
}
  0x3d   : > { %s3813_s23 = scalar_lea.vmem %s4038_s25, 2048  ;;  %s3903_s29 = smov [#allocation4]  }
  0x3e   : > { %p3814_p8 = scmp.ne.s32.totalorder %s4038_s25, %s3813_s23  ;;  %s3818_s30 = sshll.u32 %s3903_s29, 4  ;;  %s3819_s30 = int_to_ptr.vmem [resolvable:$false] %s3818_s30 }
  0x3f   : > { %s3820_s22 = scalar_lea.vmem %s3819_s30, 4096  ;;  %p3821_p3 = scmp.lt.s32.totalorder %s4038_s25, %s3819_s30 }
  0x40   : > { %p3816_p10 = pnand %p3814_p8, %p3800_p0  ;;  %p3822_p7 = scmp.lt.s32.totalorder %s3820_s22, %s3813_s23 }
  0x42   : > { %p3817_p13 = pneg %p3816_p10  ;;  %p3823_p9 = por %p3822_p7, %p3821_p3 }
  0x44   : > { %p3824_p1 = pnand %p3823_p9, %p3817_p13 }
  0x46   : > { %3827 = shalt.err (!%p3824_p1)
}
  0x47   : > { %3634 = dma.hbm_to_vmem [thread:$0]  (!%p4034_p11), %s4032_s4, 2048, %s4038_s25, %s4040_s5, %s3901_s8, %s3901_s8, %s3902_s9  }
  0x48   : > { %p4813_p0 = scmp.ne.s32.totalorder %s4808_s20, 0 }
  0x49   : > { %s4074_s6 = sand.u32 (!%p4813_p0), 1, %s3890_s13   ;;  %p4814_p5 = scmp.ne.s32.totalorder (!%p4813_p0), %s4806_s18, 0 }
  0x4a   : > { %171 = sbr.rel (%p4813_p0) target bundleno = 644 (0x284), region = 32  ;;  %s2762_s7 = sshll.u32 (!%p4813_p0), %s4074_s6, 7 }
  0x4b   : > { %s174_s10 = scalar_lea.sflag (!%p4813_p0), [#allocation5], %s4074_s6  ;;  %s4080_s26 = scalar_lea.vmem (!%p4813_p0), [#allocation4], %s2762_s7 }
  0x51   : > { %3873 = dma.done.wait (%p4814_p5), %s174_s10, 2048  }
  0x52   : > { %3875 = vsyncadd (%p4814_p5), %s174_s10, 4294965248  ;;  %p4815_p11 = scmp.eq.s32.totalorder %s3950_s16, 0 }
  0x54   : > { %3877 = dma.done.wait (%p4815_p11), [#allocation8], 9216   ;;  %p4816_p2 = pmov %p4815_p11 }
  0x55   : > { %v3904_v0 = vmov 0.0   ;;  %v3681_v1 = vld [vmem:[#allocation7 + $0x40] sm:$0xff]   ;;  %v3683_v3 = vld [vmem:[#allocation7 + $0x48] sm:$0xff]   ;;  %v3685_v5 = vld [vmem:[#allocation7 + $0x50] sm:$0xff]   ;;  %v3905_v49 = vmov 0.0|0.0   ;;  %s4696_s8 = scalar_lea.vmem [#allocation9], %s2762_s7 }
  0x56   : > { %3879 = vsyncadd (%p4816_p2), [#allocation8], 4294958080  ;;  %205 = vst [vmem:[#allocation2] sm:$0xff] %v3904_v0  ;;  %v3682_v2 = vld [vmem:[#allocation7] sm:$0xff]   ;;  %3083 = vmatprep.subr.bf16.mxu0 %v3681_v1  ;;  %3603 = vmatprep.subr.bf16.mxu1 %v3681_v1  ;;  %v3684_v4 = vld [vmem:[#allocation7 + $0x8] sm:$0xff]   ;;  %s2908_s9 = sshll.u32 %s3950_s16, 11 }
  0x57   : > { %206 = vst [vmem:[#allocation2 + $0x8] sm:$0xff] %v3904_v0  ;;  %207 = vst [vmem:[#allocation2 + $0x10] sm:$0x3] %v3904_v0  ;;  %3084 = vmatpush3.bf16.msra.mxu0 %v3682_v2  ;;  %3611 = vmatpush3.bf16.msra.mxu1 %v3682_v2  ;;  %v3686_v6 = vld [vmem:[#allocation7 + $0x10] sm:$0xff]   ;;  %v3687_v7 = vld [vmem:[#allocation7 + $0x58] sm:$0xff]   ;;  %s2671_s4 = sshll.u32 %s4696_s8, 4  ;;  %s4752_s11 = scalar_lea.hbm %s4802_s3, %s2908_s9  ;;  %s4754_s4 = int_to_ptr.vmem [resolvable:$true] %s2671_s4 }
  0x58   : > { %208 = vst [vmem:[#allocation2 + $0x18] sm:$0xff] %v3904_v0  ;;  %209 = vst [vmem:[#allocation2 + $0x20] sm:$0xff] %v3904_v0  ;;  %3085 = vmatprep.subr.bf16.mxu0 %v3683_v3  ;;  %3604 = vmatprep.subr.bf16.mxu1 %v3683_v3  ;;  %v3688_v8 = vld [vmem:[#allocation7 + $0x18] sm:$0xff]   ;;  %v3689_v9 = vld [vmem:[#allocation7 + $0x60] sm:$0xff]   ;;  %s2658_s27 = scalar_lea.sflag [#allocation6], %s4074_s6  ;;  %s3828_s28 = scalar_lea.vmem %s4754_s4, 2048 }
  0x59   : > { %210 = vst [vmem:[#allocation2 + $0x28] sm:$0x3] %v3904_v0  ;;  %211 = vst [vmem:[#allocation2 + $0x30] sm:$0xff] %v3904_v0  ;;  %v3690_v10 = vld [vmem:[#allocation7 + $0x20] sm:$0xff]   ;;  %v3691_v11 = vld [vmem:[#allocation7 + $0x68] sm:$0xff]   ;;  %p3829_p4 = scmp.ne.s32.totalorder %s4754_s4, %s3828_s28  ;;  %s3906_s16 = smov [#allocation9]  }
  0x5a   : > { %212 = vst [vmem:[#allocation2 + $0x38] sm:$0xff] %v3904_v0  ;;  %213 = vst [vmem:[#allocation2 + $0x40] sm:$0x3] %v3904_v0  ;;  %v3063_v14 = vld [vmem:[%s4080_s26 + $0x58] sm:$0xff]   ;;  %v3692_v19 = vld [vmem:[#allocation7 + $0x28] sm:$0xff]   ;;  %s3832_s23 = sshll.u32 %s3906_s16, 4  ;;  %s3833_s23 = int_to_ptr.vmem [resolvable:$false] %s3832_s23 }
  0x5b   : > { %214 = vst [vmem:[#allocation2 + $0x48] sm:$0xff] %v3904_v0  ;;  %215 = vst [vmem:[#allocation2 + $0x50] sm:$0xff] %v3904_v0  ;;  %3086 = vmatpush3.bf16.msra.mxu0 %v3684_v4  ;;  %3612 = vmatpush3.bf16.msra.mxu1 %v3684_v4  ;;  %v2955_v16 = vunpack.c.l.bf16 %v3063_v14  ;;  %v2956_v17 = vunpack.c.h.bf16 %v3063_v14  ;;  %v3697_v18 = vld [vmem:[%s4080_s26 + $0x58] sm:$0xff]  ;;  %v3693_v20 = vld [vmem:[#allocation7 + $0x70] sm:$0xff]   ;;  %p3830_p6 = pnand %p3829_p4, %p4023_p12  ;;  %s3834_s29 = scalar_lea.vmem %s3833_s23, 4096 }
  0x5c   : > { %216 = vst [vmem:[#allocation2 + $0x58] sm:$0x3] %v3904_v0  ;;  %217 = vst [vmem:[#allocation2 + $0x60] sm:$0xff] %v3904_v0  ;;  %3087 = vmatprep.subr.bf16.mxu0 %v3685_v5  ;;  %3605 = vmatprep.subr.bf16.mxu1 %v3685_v5  ;;  %v3694_v21 = vld [vmem:[#allocation7 + $0x30] sm:$0xff]   ;;  %v2910_v22 = vld [vmem:[%s4080_s26] sm:$0xff]   ;;  %p3835_p10 = scmp.lt.s32.totalorder %s4754_s4, %s3833_s23  ;;  %p3836_p13 = scmp.lt.s32.totalorder %s3834_s29, %s3828_s28 }
  0x5d   : > { %218 = vst [vmem:[#allocation2 + $0x68] sm:$0xff] %v3904_v0  ;;  %219 = vst [vmem:[#allocation2 + $0x70] sm:$0x3] %v3904_v0  ;;  %1788 = vmatprep.mubr.bf16.mxu1 %v3697_v18  ;;  %v3695_v23 = vld [vmem:[#allocation7 + $0x78] sm:$0xff]   ;;  %v2911_v24 = vunpack.c.l.bf16 %v2910_v22  ;;  %v2912_v25 = vunpack.c.h.bf16 %v2910_v22  ;;  %v3064_v26 = vld [vmem:[%s4080_s26 + $0x60] sm:$0xff]   ;;  %p3831_p8 = pneg %p3830_p6 }
  0x5e   : > { %220 = vst [vmem:[#allocation2 + $0x78] sm:$0xff] %v3904_v0  ;;  %221 = vst [vmem:[#allocation2 + $0x80] sm:$0xff] %v3904_v0  ;;  %v420_v12 = vld [vmem:[#allocation2 + $0x1] sm:$0xff]  ;;  %v421_v13 = vld [vmem:[#allocation2 + $0x9] sm:$0xff]  ;;  %v2959_v28 = vunpack.c.l.bf16 %v3064_v26  ;;  %v2960_v29 = vunpack.c.h.bf16 %v3064_v26  ;;  %p3837_p3 = por %p3836_p13, %p3835_p10 }
  0x5f   : > { %222 = vst [vmem:[#allocation2 + $0x88] sm:$0x3] %v3904_v0  ;;  %223 = vst [vmem:[#allocation2 + $0x90] sm:$0xff] %v3904_v0  ;;  %3088 = vmatpush3.bf16.msra.mxu0 %v3686_v6  ;;  %3613 = vmatpush3.bf16.msra.mxu1 %v3686_v6  ;;  %v452_v15 = vpack.c.bf16 %v421_v13, %v420_v12  ;;  %v3696_v27 = vld [vmem:[#allocation7 + $0x38] sm:$0xff]   ;;  %v3698_v31 = vld [vmem:[#allocation7 + $0xc0] sm:$0xff]  }
  0x60   : > { %224 = vst [vmem:[#allocation2 + $0x98] sm:$0xff] %v3904_v0  ;;  %225 = vst [vmem:[#allocation2 + $0xa0] sm:$0x3] %v3904_v0  ;;  %3089 = vmatprep.subr.bf16.mxu0 %v3687_v7  ;;  %3606 = vmatprep.subr.bf16.mxu1 %v3687_v7  ;;  %v3701_v33 = vld [vmem:[#allocation7 + $0x140] sm:$0xff]   ;;  %v3053_v35 = vld [vmem:[%s4080_s26 + $0x8] sm:$0xff]   ;;  %p3838_p7 = pnand %p3837_p3, %p3831_p8 }
  0x61   : > { %226 = vst [vmem:[#allocation2 + $0xa8] sm:$0xff] %v3904_v0  ;;  %227 = vst [vmem:[#allocation2 + $0xb0] sm:$0xff] %v3904_v0  ;;  %1692 = vmatprep.mubr.bf16.mxu0 %v452_v15  ;;  %v3699_v34 = vld [vmem:[#allocation7 + $0x80] sm:$0xff]   ;;  %v3700_v37 = vld [vmem:[#allocation7 + $0xc8] sm:$0xff]   ;;  %v2915_v39 = vunpack.c.l.bf16 %v3053_v35  ;;  %v2916_v40 = vunpack.c.h.bf16 %v3053_v35 }
  0x62   : > { %228 = vst [vmem:[#allocation2 + $0xb8] sm:$0x3] %v3904_v0  ;;  %229 = vst [vmem:[#allocation2 + $0xc0] sm:$0xff] %v3904_v0  ;;  %v3703_v38 = vld [vmem:[#allocation7 + $0x100] sm:$0xff]   ;;  %v3065_v41 = vld [vmem:[%s4080_s26 + $0x68] sm:$0xff]  }
  0x63   : > { %230 = vst [vmem:[#allocation2 + $0xc8] sm:$0xff] %v3904_v0  ;;  %231 = vst [vmem:[#allocation2 + $0xd0] sm:$0x3] %v3904_v0  ;;  %3090 = vmatpush3.bf16.msra.mxu0 %v3688_v8  ;;  %3614 = vmatpush3.bf16.msra.mxu1 %v3688_v8  ;;  %v4099_v42 = vld [vmem:[%s4080_s26] sm:$0xff]  ;;  %v2963_v43 = vunpack.c.l.bf16 %v3065_v41  ;;  %v2964_v44 = vunpack.c.h.bf16 %v3065_v41  ;;  %v3702_v46 = vld [vmem:[#allocation7 + $0x88] sm:$0xff]  }
  0x64   : > { %232 = vst [vmem:[#allocation2 + $0xd8] sm:$0xff] %v3904_v0  ;;  %233 = vst [vmem:[#allocation2 + $0xe0] sm:$0xff] %v3904_v0  ;;  %3091 = vmatprep.subr.bf16.mxu0 %v3689_v9  ;;  %3607 = vmatprep.subr.bf16.mxu1 %v3689_v9  ;;  %v3705_v45 = vld [vmem:[%s4080_s26 + $0x60] sm:$0xff]  ;;  %v3713_v48 = vld [vmem:[#allocation7 + $0x148] sm:$0xff]  }
  0x65   : > { %234 = vst [vmem:[#allocation2 + $0xe8] sm:$0x3] %v3904_v0  ;;  %235 = vst [vmem:[#allocation2 + $0xf0] sm:$0xff] %v3904_v0  ;;  %v3715_v53 = vld [vmem:[#allocation7 + $0x108] sm:$0xff]   ;;  %v3706_v54 = vld [vmem:[#allocation7 + $0xd0] sm:$0xff]  }
  0x66   : > { %236 = vst [vmem:[#allocation2 + $0xf8] sm:$0xff] %v3904_v0  ;;  %237 = vst [vmem:[#allocation2 + $0x100] sm:$0x3] %v3904_v0  ;;  %v3054_v57 = vld [vmem:[%s4080_s26 + $0x10] sm:$0xff]   ;;  %v4111_v60 = vld [vmem:[%s4080_s26 + $0x8] sm:$0xff] }
  0x67   : > { %238 = vst [vmem:[#allocation2 + $0x108] sm:$0xff] %v3904_v0  ;;  %239 = vst [vmem:[#allocation2 + $0x110] sm:$0xff] %v3904_v0  ;;  %3092 = vmatpush3.bf16.msra.mxu0 %v3690_v10  ;;  %3615 = vmatpush3.bf16.msra.mxu1 %v3690_v10  ;;  %v3066_v58 = vld [vmem:[%s4080_s26 + $0x70] sm:$0xff]   ;;  %v2919_v61 = vunpack.c.l.bf16 %v3054_v57  ;;  %v2920_v62 = vunpack.c.h.bf16 %v3054_v57  ;;  %v3708_v1 = vld [vmem:[#allocation7 + $0xd8] sm:$0xff]  }
  0x68   : > { %240 = vst [vmem:[#allocation2 + $0x118] sm:$0x3] %v3904_v0  ;;  %241 = vst [vmem:[#allocation2 + $0x120] sm:$0xff] %v3904_v0  ;;  %3093 = vmatprep.subr.bf16.mxu0 %v3691_v11  ;;  %3608 = vmatprep.subr.bf16.mxu1 %v3691_v11  ;;  %v3707_v59 = vld [vmem:[#allocation7 + $0x90] sm:$0xff]   ;;  %v2967_v63 = vunpack.c.l.bf16 %v3066_v58  ;;  %v3711_v2 = vld [vmem:[%s4080_s26 + $0x68] sm:$0xff] }
  0x69   : > { %242 = vst [vmem:[#allocation2 + $0x128] sm:$0xff] %v3904_v0  ;;  %243 = vst [vmem:[#allocation2 + $0x130] sm:$0x3] %v3904_v0  ;;  %v3709_v3 = vld [vmem:[#allocation7 + $0x98] sm:$0xff]   ;;  %v3712_v7 = vld [vmem:[#allocation7 + $0xe0] sm:$0xff]  }
  0x6a   : > { %244 = vst [vmem:[#allocation2 + $0x138] sm:$0xff] %v3904_v0  ;;  %245 = vst [vmem:[#allocation2 + $0x140] sm:$0xff] %v3904_v0  ;;  %v3723_v9 = vld [vmem:[#allocation7 + $0x150] sm:$0xff]   ;;  %v3055_v13 = vld [vmem:[%s4080_s26 + $0x18] sm:$0xff]  }
  0x6b   : > { %246 = vst [vmem:[#allocation2 + $0x148] sm:$0x3] %v3904_v0  ;;  %247 = vst [vmem:[#allocation2 + $0x150] sm:$0xff] %v3904_v0  ;;  %3094 = vmatpush3.bf16.msra.mxu0 %v3692_v19  ;;  %3616 = vmatpush3.bf16.msra.mxu1 %v3692_v19  ;;  %v3725_v12 = vld [vmem:[#allocation7 + $0x110] sm:$0xff]   ;;  %v3714_v14 = vld [vmem:[#allocation7 + $0xa0] sm:$0xff]  }
  0x6c   : > { %248 = vst [vmem:[#allocation2 + $0x158] sm:$0xff] %v3904_v0  ;;  %249 = vst [vmem:[#allocation2 + $0x160] sm:$0x3] %v3904_v0  ;;  %3095 = vmatprep.subr.bf16.mxu0 %v3693_v20  ;;  %3609 = vmatprep.subr.bf16.mxu1 %v3693_v20  ;;  %v4123_v15 = vld [vmem:[%s4080_s26 + $0x10] sm:$0xff]  ;;  %v3716_v18 = vld [vmem:[#allocation7 + $0xe8] sm:$0xff]  }
  0x6d   : > { %250 = vst [vmem:[#allocation2 + $0x168] sm:$0xff] %v3904_v0  ;;  %251 = vst [vmem:[#allocation2 + $0x170] sm:$0xff] %v3904_v0  ;;  %v3719_v19 = vld [vmem:[%s4080_s26 + $0x70] sm:$0xff]  ;;  %v3717_v20 = vld [vmem:[#allocation7 + $0xa8] sm:$0xff]  }
  0x6e   : > { %252 = vst [vmem:[#allocation2 + $0x178] sm:$0x3] %v3904_v0  ;;  %253 = vst [vmem:[#allocation2 + $0x180] sm:$0xff] %v3904_v0  ;;  %v3720_v26 = vld [vmem:[#allocation7 + $0xf0] sm:$0xff]   ;;  %v4136_v35 = vld [vmem:[%s4080_s26 + $0x18] sm:$0xff] }
  0x6f   : > { %254 = vst [vmem:[#allocation2 + $0x188] sm:$0xff] %v3904_v0  ;;  %255 = vst [vmem:[#allocation2 + $0x190] sm:$0x3] %v3904_v0  ;;  %3096 = vmatpush3.bf16.msra.mxu0 %v3694_v21  ;;  %3617 = vmatpush3.bf16.msra.mxu1 %v3694_v21  ;;  %v3728_v57 = vld [vmem:[#allocation7 + $0x180] sm:$0xff]  }
  0x70   : > { %256 = vst [vmem:[#allocation2 + $0x198] sm:$0xff] %v3904_v0  ;;  %257 = vst [vmem:[#allocation2 + $0x1a0] sm:$0xff] %v3904_v0  ;;  %3097 = vmatprep.subr.bf16.mxu0 %v3695_v23  ;;  %3610 = vmatprep.subr.bf16.mxu1 %v3695_v23 }
  0x71   : > { %258 = vst [vmem:[#allocation2 + $0x1a8] sm:$0x3] %v3904_v0  ;;  %346 = vst [vmem:[#allocation2 + $0x121] sm:$0xff] %v2955_v16  ;;  %v2968_v0 = vunpack.c.h.bf16 %v3066_v58  ;;  %v2923_v16 = vunpack.c.l.bf16 %v3055_v13  ;;  %v4147_v58 = vld [vmem:[%s4080_s26 + $0x20] sm:$0xff] }
  0x72   : > { %347 = vst [vmem:[#allocation2 + $0x129] sm:$0xff] %v2956_v17  ;;  %324 = vst [vmem:[#allocation2 + $0x19] sm:$0xff] %v2911_v24  ;;  %v2924_v17 = vunpack.c.h.bf16 %v3055_v13  ;;  %v4158_v13 = vld [vmem:[%s4080_s26 + $0x28] sm:$0xff] }
  0x73   : > { %325 = vst [vmem:[#allocation2 + $0x21] sm:$0xff] %v2912_v25  ;;  %348 = vst [vmem:[#allocation2 + $0x139] sm:$0xff] %v2959_v28  ;;  %3098 = vmatpush3.bf16.msra.mxu0 %v3696_v27  ;;  %3618 = vmatpush3.bf16.msra.mxu1 %v3696_v27  ;;  %v3056_v25 = vld [vmem:[%s4080_s26 + $0x20] sm:$0xff]  }
  0x74   : > { %349 = vst [vmem:[#allocation2 + $0x141] sm:$0xff] %v2960_v29  ;;  %3195 = vmatprep.subr.bf16.mxu1 %v3698_v31  ;;  %3307 = vmatprep.subr.bf16.mxu0 %v3701_v33  ;;  %326 = vst [vmem:[#allocation2 + $0x31] sm:$0xff] %v2915_v39  ;;  %v2927_v27 = vunpack.c.l.bf16 %v3056_v25  ;;  %v2928_v28 = vunpack.c.h.bf16 %v3056_v25  ;;  %v3730_v29 = vld [vmem:[#allocation7 + $0x158] sm:$0xff]   ;;  %v3057_v33 = vld [vmem:[%s4080_s26 + $0x28] sm:$0xff]  }
  0x75   : > { %327 = vst [vmem:[#allocation2 + $0x39] sm:$0xff] %v2916_v40  ;;  %350 = vst [vmem:[#allocation2 + $0x151] sm:$0xff] %v2963_v43  ;;  %v3722_v39 = vld [vmem:[#allocation7 + $0xf8] sm:$0xff]  }
  0x76   : > { %351 = vst [vmem:[#allocation2 + $0x159] sm:$0xff] %v2964_v44  ;;  %1693 = vmatmul.mubr.bf16.vlgmr.msra.gmra.mrb[0].mxu0 %v3905_v49  ;;  %328 = vst [vmem:[#allocation2 + $0x49] sm:$0xff] %v2919_v61  ;;  %v3724_v40 = vld [vmem:[#allocation7 + $0xb8] sm:$0xff]   ;;  %v3058_v49 = vld [vmem:[%s4080_s26 + $0x30] sm:$0xff]  }
  0x77   : > { %3308 = vmatpush3.bf16.msra.mxu0 %v3703_v38  ;;  %1700 = vmatprep.mubr.bf16.mxu0 %v4099_v42  ;;  %329 = vst [vmem:[#allocation2 + $0x51] sm:$0xff] %v2920_v62  ;;  %352 = vst [vmem:[#allocation2 + $0x169] sm:$0xff] %v2967_v63  ;;  %v2932_v38 = vunpack.c.h.bf16 %v3057_v33  ;;  %v484_v43 = vld [vmem:[#allocation2 + $0x2] sm:$0xff]  ;;  %v485_v44 = vld [vmem:[#allocation2 + $0xa] sm:$0xff] }
  0x78   : > { %v380_v30 = vld [vmem:[#allocation2 + $0x120] sm:$0xff]  ;;  %3309 = vmatprep.subr.bf16.mxu0 %v3713_v48  ;;  %353 = vst [vmem:[#allocation2 + $0x171] sm:$0xff] %v2968_v0  ;;  %330 = vst [vmem:[#allocation2 + $0x61] sm:$0xff] %v2923_v16  ;;  %v3736_v48 = vld [vmem:[#allocation7 + $0x120] sm:$0xff]  }
  0x79   : > { %v381_v32 = vld [vmem:[#allocation2 + $0x128] sm:$0xff]  ;;  %v358_v47 = vld [vmem:[#allocation2 + $0x18] sm:$0xff]  ;;  %331 = vst [vmem:[#allocation2 + $0x69] sm:$0xff] %v2924_v17  ;;  %332 = vst [vmem:[#allocation2 + $0x79] sm:$0xff] %v2927_v27 }
  0x7a   : > { %v4095_v36 = vpack.c.bf16 %v381_v32, %v380_v30  ;;  %v359_v50 = vld [vmem:[#allocation2 + $0x20] sm:$0xff]  ;;  %v382_v51 = vld [vmem:[#allocation2 + $0x138] sm:$0xff]  ;;  %333 = vst [vmem:[#allocation2 + $0x81] sm:$0xff] %v2928_v28  ;;  %v3731_v32 = vld [vmem:[#allocation7 + $0x118] sm:$0xff]  }
  0x7b   : > { %v383_v52 = vld [vmem:[#allocation2 + $0x140] sm:$0xff]  ;;  %v4104_v55 = vpack.c.bf16 %v359_v50, %v358_v47  ;;  %3310 = vmatpush3.bf16.msra.mxu0 %v3715_v53  ;;  %v360_v4 = vld [vmem:[#allocation2 + $0x30] sm:$0xff]  ;;  %335 = vst [vmem:[#allocation2 + $0x99] sm:$0xff] %v2932_v38  ;;  %v2935_v50 = vunpack.c.l.bf16 %v3058_v49  ;;  %v516_v53 = vpack.c.bf16 %v485_v44, %v484_v43  ;;  %v3748_v25 = vld [vmem:[#allocation7 + $0x198] sm:$0xff]  }
  0x7c   : > { %1789 = vmatmul.mubr.bf16.vlgmr.msra.gmra.mrb[0].mxu1 %v4095_v36  ;;  %v4106_v56 = vpack.c.bf16 %v383_v52, %v382_v51  ;;  %v361_v5 = vld [vmem:[#allocation2 + $0x38] sm:$0xff]  ;;  %v384_v6 = vld [vmem:[#allocation2 + $0x150] sm:$0xff]  ;;  %3311 = vmatprep.subr.bf16.mxu0 %v3723_v9  ;;  %v2936_v51 = vunpack.c.h.bf16 %v3058_v49  ;;  %v487_v0 = vld [vmem:[#allocation2 + $0x22] sm:$0xff] }
  0x7d   : > { %3196 = vmatpush3.bf16.msra.mxu1 %v3699_v34  ;;  %1796 = vmatprep.mubr.bf16.mxu1 %v3705_v45  ;;  %v385_v8 = vld [vmem:[#allocation2 + $0x158] sm:$0xff]  ;;  %v4117_v10 = vpack.c.bf16 %v361_v5, %v360_v4  ;;  %v362_v21 = vld [vmem:[#allocation2 + $0x48] sm:$0xff]  ;;  %v3721_v34 = vld [vmem:[#allocation7 + $0xb0] sm:$0xff]   ;;  %336 = vst [vmem:[#allocation2 + $0xa9] sm:$0xff] %v2935_v50 }
  0x7e   : > { %3197 = vmatprep.subr.bf16.mxu1 %v3700_v37  ;;  %1701 = vmatmul.mubr.bf16.gmra.mrb[4].mxu0 %v4104_v55  ;;  %v4119_v11 = vpack.c.bf16 %v385_v8, %v384_v6  ;;  %v363_v22 = vld [vmem:[#allocation2 + $0x50] sm:$0xff]  ;;  %v386_v23 = vld [vmem:[#allocation2 + $0x168] sm:$0xff]  ;;  %v2931_v37 = vunpack.c.l.bf16 %v3057_v33  ;;  %337 = vst [vmem:[#allocation2 + $0xb1] sm:$0xff] %v2936_v51  ;;  %v486_v63 = vld [vmem:[#allocation2 + $0x1a] sm:$0xff] }
  0x7f   : > { %1708 = vmatprep.mubr.bf16.mxu0 %v4111_v60  ;;  %3312 = vmatpush3.bf16.msra.mxu0 %v3725_v12  ;;  %v387_v24 = vld [vmem:[#allocation2 + $0x170] sm:$0xff]  ;;  %v4130_v30 = vpack.c.bf16 %v363_v22, %v362_v21  ;;  %v364_v41 = vld [vmem:[#allocation2 + $0x60] sm:$0xff]  ;;  %v3741_v4 = vld [vmem:[#allocation7 + $0x128] sm:$0xff]   ;;  %v4155_v12 = vpack.c.bf16 %v487_v0, %v486_v63 }
  0x80   : > { %v4132_v31 = vpack.c.bf16 %v387_v24, %v386_v23  ;;  %3313 = vmatprep.subr.bf16.mxu0 %v3730_v29  ;;  %334 = vst [vmem:[#allocation2 + $0x91] sm:$0xff] %v2931_v37  ;;  %v365_v45 = vld [vmem:[#allocation2 + $0x68] sm:$0xff]  ;;  %v3735_v47 = vld [vmem:[#allocation7 + $0x160] sm:$0xff]   ;;  %v366_v62 = vld [vmem:[#allocation2 + $0x78] sm:$0xff] }
  0x81   : > { %3198 = vmatpush3.bf16.msra.mxu1 %v3702_v46  ;;  %v3727_v46 = vld [vmem:[#allocation7 + $0x1c0] sm:$0xff]   ;;  %v4143_v52 = vpack.c.bf16 %v365_v45, %v364_v41  ;;  %v3740_v5 = vld [vmem:[#allocation7 + $0x1d0] sm:$0xff]   ;;  %v3747_v24 = vld [vmem:[#allocation7 + $0x1d8] sm:$0xff]  }
  0x82   : > { %3199 = vmatprep.subr.bf16.mxu1 %v3706_v54  ;;  %v3059_v54 = vld [vmem:[%s4080_s26 + $0x38] sm:$0xff]   ;;  %v3060_v6 = vld [vmem:[%s4080_s26 + $0x40] sm:$0xff]   ;;  %v489_v17 = vld [vmem:[#allocation2 + $0x3a] sm:$0xff] }
  0x83   : > { %3314 = vmatpush3.bf16.msra.mxu0 %v3731_v32  ;;  %v2940_v61 = vunpack.c.h.bf16 %v3059_v54  ;;  %v2944_v8 = vunpack.c.h.bf16 %v3060_v6  ;;  %v488_v16 = vld [vmem:[#allocation2 + $0x32] sm:$0xff]  ;;  %v4171_v33 = vld [vmem:[%s4080_s26 + $0x30] sm:$0xff]  ;;  %v3751_v37 = vld [vmem:[#allocation7 + $0x138] sm:$0xff]  }
  0x84   : > { %1797 = vmatmul.mubr.bf16.gmra.mrb[4].mxu1 %v4106_v56  ;;  %3315 = vmatprep.subr.bf16.mxu0 %v3735_v47  ;;  %v4168_v32 = vpack.c.bf16 %v489_v17, %v488_v16  ;;  %v490_v38 = vld [vmem:[#allocation2 + $0x4a] sm:$0xff]  ;;  %v3755_v49 = vld [vmem:[#allocation7 + $0x1e8] sm:$0xff]  }
  0x85   : > { %3200 = vmatpush3.bf16.msra.mxu1 %v3707_v59  ;;  %1804 = vmatprep.mubr.bf16.mxu1 %v3711_v2  ;;  %v2939_v59 = vunpack.c.l.bf16 %v3059_v54  ;;  %339 = vst [vmem:[#allocation2 + $0xc9] sm:$0xff] %v2940_v61  ;;  %v3739_v2 = vld [vmem:[#allocation7 + $0x168] sm:$0xff]   ;;  %341 = vst [vmem:[#allocation2 + $0xe1] sm:$0xff] %v2944_v8  ;;  %v370_v41 = vld [vmem:[#allocation2 + $0xa8] sm:$0xff] }
  0x86   : > { %3201 = vmatprep.subr.bf16.mxu1 %v3708_v1  ;;  %1709 = vmatmul.mubr.bf16.gmra.mrb[8].mxu0 %v4117_v10  ;;  %v3734_v1 = vld [vmem:[#allocation7 + $0x188] sm:$0xff]   ;;  %v371_v43 = vld [vmem:[#allocation2 + $0xb0] sm:$0xff]  ;;  %v3759_v61 = vld [vmem:[#allocation7 + $0x1b0] sm:$0xff]  }
  0x87   : > { %1716 = vmatprep.mubr.bf16.mxu0 %v4123_v15  ;;  %3316 = vmatpush3.bf16.msra.mxu0 %v3736_v48  ;;  %338 = vst [vmem:[#allocation2 + $0xc1] sm:$0xff] %v2939_v59  ;;  %v369_v21 = vld [vmem:[#allocation2 + $0x98] sm:$0xff]  ;;  %v3753_v44 = vld [vmem:[#allocation7 + $0x1a0] sm:$0xff]   ;;  %v4184_v48 = vld [vmem:[%s4080_s26 + $0x38] sm:$0xff] }
  0x88   : > { %3317 = vmatprep.subr.bf16.mxu0 %v3739_v2  ;;  %v4177_v45 = vld [vmem:[#allocation7 + $0x200] sm:$0xff]   ;;  %v3756_v50 = vld [vmem:[#allocation7 + $0x1a8] sm:$0xff]   ;;  %v3758_v59 = vld [vmem:[#allocation7 + $0x1f0] sm:$0xff]  }
  0x89   : > { %3202 = vmatpush3.bf16.msra.mxu1 %v3709_v3  ;;  %v367_v3 = vld [vmem:[#allocation2 + $0x80] sm:$0xff]  ;;  %v493_v54 = vld [vmem:[#allocation2 + $0x6a] sm:$0xff]  ;;  %v4208_v16 = vld [vmem:[%s4080_s26 + $0x48] sm:$0xff] }
  0x8a   : > { %3203 = vmatprep.subr.bf16.mxu1 %v3712_v7  ;;  %v2943_v7 = vunpack.c.l.bf16 %v3060_v6  ;;  %v4153_v9 = vpack.c.bf16 %v367_v3, %v366_v62  ;;  %v4196_v63 = vld [vmem:[%s4080_s26 + $0x40] sm:$0xff]  ;;  %v3761_v0 = vld [vmem:[#allocation7 + $0x1f8] sm:$0xff]   ;;  %v494_v2 = vld [vmem:[#allocation2 + $0x7a] sm:$0xff] }
  0x8b   : > { %3318 = vmatpush3.bf16.msra.mxu0 %v3741_v4  ;;  %v3067_v3 = vld [vmem:[%s4080_s26 + $0x78] sm:$0xff]   ;;  %v496_v17 = vld [vmem:[#allocation2 + $0x92] sm:$0xff] }
  0x8c   : > { %1805 = vmatmul.mubr.bf16.gmra.mrb[8].mxu1 %v4119_v11  ;;  %340 = vst [vmem:[#allocation2 + $0xd9] sm:$0xff] %v2943_v7  ;;  %v495_v6 = vld [vmem:[#allocation2 + $0x82] sm:$0xff]  ;;  %v2971_v7 = vunpack.c.l.bf16 %v3067_v3  ;;  %v2972_v8 = vunpack.c.h.bf16 %v3067_v3  ;;  %v512_v3 = vld [vmem:[#allocation2 + $0x152] sm:$0xff] }
  0x8d   : > { %3204 = vmatpush3.bf16.msra.mxu1 %v3714_v14  ;;  %1812 = vmatprep.mubr.bf16.mxu1 %v3719_v19  ;;  %v3744_v14 = vld [vmem:[#allocation7 + $0x170] sm:$0xff]   ;;  %v3061_v19 = vld [vmem:[%s4080_s26 + $0x48] sm:$0xff]  }
  0x8e   : > { %3205 = vmatprep.subr.bf16.mxu1 %v3716_v18  ;;  %1717 = vmatmul.mubr.bf16.gmra.mrb[12].mxu0 %v4130_v30  ;;  %v3745_v18 = vld [vmem:[#allocation7 + $0x130] sm:$0xff]   ;;  %v2947_v22 = vunpack.c.l.bf16 %v3061_v19  ;;  %v2948_v23 = vunpack.c.h.bf16 %v3061_v19  ;;  %354 = vst [vmem:[#allocation2 + $0x181] sm:$0xff] %v2971_v7  ;;  %355 = vst [vmem:[#allocation2 + $0x189] sm:$0xff] %v2972_v8  ;;  %v514_v8 = vld [vmem:[#allocation2 + $0x16a] sm:$0xff] }
  0x8f   : > { %1724 = vmatprep.mubr.bf16.mxu0 %v4136_v35  ;;  %3319 = vmatprep.subr.bf16.mxu0 %v3744_v14  ;;  %v372_v51 = vld [vmem:[#allocation2 + $0xc0] sm:$0xff] }
  0x90   : > { %3320 = vmatpush3.bf16.msra.mxu0 %v3745_v18  ;;  %342 = vst [vmem:[#allocation2 + $0xf1] sm:$0xff] %v2947_v22  ;;  %343 = vst [vmem:[#allocation2 + $0xf9] sm:$0xff] %v2948_v23  ;;  %v4219_v23 = vld [vmem:[%s4080_s26 + $0x50] sm:$0xff] }
  0x91   : > { %3206 = vmatpush3.bf16.msra.mxu1 %v3717_v20  ;;  %v368_v20 = vld [vmem:[#allocation2 + $0x90] sm:$0xff] }
  0x92   : > { %3207 = vmatprep.subr.bf16.mxu1 %v3720_v26  ;;  %v3062_v26 = vld [vmem:[%s4080_s26 + $0x50] sm:$0xff]   ;;  %v4166_v29 = vpack.c.bf16 %v369_v21, %v368_v20 }
  0x93   : > { %v2951_v27 = vunpack.c.l.bf16 %v3062_v26  ;;  %v2952_v28 = vunpack.c.h.bf16 %v3062_v26  ;;  %v374_v4 = vld [vmem:[#allocation2 + $0xd8] sm:$0xff] }
  0x94   : > { %1813 = vmatmul.mubr.bf16.gmra.mrb[12].mxu1 %v4132_v31  ;;  %v497_v20 = vld [vmem:[#allocation2 + $0x9a] sm:$0xff] }
  0x95   : > { %3208 = vmatpush3.bf16.msra.mxu1 %v3721_v34  ;;  %1853 = vmatprep.mubr.bf16.mxu1 %v4104_v55  ;;  %v3733_v55 = vld [vmem:[#allocation7 + $0x1c8] sm:$0xff]   ;;  %344 = vst [vmem:[#allocation2 + $0x109] sm:$0xff] %v2951_v27  ;;  %345 = vst [vmem:[#allocation2 + $0x111] sm:$0xff] %v2952_v28  ;;  %v3750_v34 = vld [vmem:[#allocation7 + $0x178] sm:$0xff]   ;;  %v4216_v22 = vpack.c.bf16 %v497_v20, %v496_v17 }
  0x96   : > { %3209 = vmatprep.subr.bf16.mxu1 %v3722_v39  ;;  %1725 = vmatmul.mubr.bf16.gmra.mrb[16].mxu0 %v4143_v52  ;;  %v491_v39 = vld [vmem:[#allocation2 + $0x52] sm:$0xff] }
  0x97   : > { %1732 = vmatprep.mubr.bf16.mxu0 %v4147_v58  ;;  %3321 = vmatprep.subr.bf16.mxu0 %v3750_v34  ;;  %v4181_v47 = vpack.c.bf16 %v491_v39, %v490_v38  ;;  %v376_v18 = vld [vmem:[#allocation2 + $0xf0] sm:$0xff]  ;;  %v377_v19 = vld [vmem:[#allocation2 + $0xf8] sm:$0xff] }
  0x98   : > { %3322 = vmatpush3.bf16.msra.mxu0 %v3751_v37  ;;  %v4214_v21 = vpack.c.bf16 %v377_v19, %v376_v18  ;;  %v499_v27 = vld [vmem:[#allocation2 + $0xb2] sm:$0xff]  ;;  %v500_v37 = vld [vmem:[#allocation2 + $0xc2] sm:$0xff]  ;;  %v501_v38 = vld [vmem:[#allocation2 + $0xca] sm:$0xff] }
  0x99   : > { %3210 = vmatpush3.bf16.msra.mxu1 %v3724_v40  ;;  %v3752_v40 = vld [vmem:[#allocation7 + $0x1e0] sm:$0xff]   ;;  %3555 = vmatprep.subr.bf16.mxu0 %v4177_v45  ;;  %v4233_v39 = vpack.c.bf16 %v501_v38, %v500_v37  ;;  %v806_v18 = vld [vmem:[#allocation2 + $0x39] sm:$0xff] }
  0x9a   : > { %3419 = vmatprep.subr.bf16.mxu1 %v3727_v46  ;;  %v4179_v46 = vpack.c.bf16 %v371_v43, %v370_v41  ;;  %v502_v41 = vld [vmem:[#allocation2 + $0xda] sm:$0xff]  ;;  %v503_v43 = vld [vmem:[#allocation2 + $0xe2] sm:$0xff]  ;;  %v805_v17 = vld [vmem:[#allocation2 + $0x31] sm:$0xff] }
  0x9b   : > { %v837_v20 = vpack.c.bf16 %v806_v18, %v805_v17  ;;  %v635_v37 = vld [vmem:[#allocation2 + $0x129] sm:$0xff] }
  0x9c   : > { %1854 = vmatmul.mubr.bf16.vlgmr.msra.gmra.mrb[16].mxu1 %v516_v53  ;;  %v492_v53 = vld [vmem:[#allocation2 + $0x62] sm:$0xff]  ;;  %v379_v26 = vld [vmem:[#allocation2 + $0x110] sm:$0xff] }
  0x9d   : > { %3420 = vmatpush3.bf16.msra.mxu1 %v3728_v57  ;;  %1861 = vmatprep.mubr.bf16.mxu1 %v4117_v10  ;;  %v3742_v10 = vld [vmem:[#allocation7 + $0x190] sm:$0xff]   ;;  %v373_v57 = vld [vmem:[#allocation2 + $0xc8] sm:$0xff]  ;;  %v4193_v62 = vpack.c.bf16 %v493_v54, %v492_v53  ;;  %v507_v53 = vld [vmem:[#allocation2 + $0x112] sm:$0xff] }
  0x9e   : > { %3421 = vmatprep.subr.bf16.mxu1 %v3733_v55  ;;  %1733 = vmatmul.mubr.bf16.gmra.mrb[20].mxu0 %v4153_v9  ;;  %v4191_v55 = vpack.c.bf16 %v373_v57, %v372_v51  ;;  %v3765_v51 = vld [vmem:[#allocation7 + $0x228] sm:$0xff]   ;;  %v3766_v54 = vld [vmem:[#allocation7 + $0x230] sm:$0xff]  }
  0x9f   : > { %1740 = vmatprep.mubr.bf16.mxu0 %v4158_v13 }
  0xa1   : > { %3422 = vmatpush3.bf16.msra.mxu1 %v3734_v1  ;;  %v3762_v1 = vld [vmem:[#allocation7 + $0x1b8] sm:$0xff]  }
  0xa2   : > { %3423 = vmatprep.subr.bf16.mxu1 %v3740_v5  ;;  %v375_v5 = vld [vmem:[#allocation2 + $0xe0] sm:$0xff] }
  0xa3   : > { %v4203_v14 = vpack.c.bf16 %v375_v5, %v374_v4  ;;  %v513_v4 = vld [vmem:[#allocation2 + $0x15a] sm:$0xff] }
  0xa4   : > { %1862 = vmatmul.mubr.bf16.gmra.mrb[20].mxu1 %v4155_v12  ;;  %v578_v5 = vld [vmem:[#allocation2 + $0x180] sm:$0xff]  ;;  %v4270_v7 = vpack.c.bf16 %v513_v4, %v512_v3 }
  0xa5   : > { %1869 = vmatprep.mubr.bf16.mxu1 %v4130_v30  ;;  %3424 = vmatpush3.bf16.msra.mxu1 %v3742_v10  ;;  %v4205_v10 = vpack.c.bf16 %v495_v6, %v494_v2  ;;  %v511_v2 = vld [vmem:[#allocation2 + $0x142] sm:$0xff] }
  0xa6   : > { %3425 = vmatprep.subr.bf16.mxu1 %v3747_v24  ;;  %1741 = vmatmul.mubr.bf16.gmra.mrb[24].mxu0 %v4166_v29  ;;  %v498_v24 = vld [vmem:[#allocation2 + $0xaa] sm:$0xff] }
  0xa7   : > { %1748 = vmatprep.mubr.bf16.mxu0 %v4171_v33  ;;  %v4227_v34 = vpack.c.bf16 %v499_v27, %v498_v24  ;;  %v579_v6 = vld [vmem:[#allocation2 + $0x188] sm:$0xff]  ;;  %v741_v24 = vld [vmem:[#allocation2 + $0x30] sm:$0xff] }
  0xa8   : > { %v634_v27 = vld [vmem:[#allocation2 + $0x121] sm:$0xff] }
  0xa9   : > { %3426 = vmatpush3.bf16.msra.mxu1 %v3748_v25  ;;  %v378_v25 = vld [vmem:[#allocation2 + $0x108] sm:$0xff]  ;;  %v4294_v38 = vpack.c.bf16 %v635_v37, %v634_v27 }
  0xaa   : > { %3427 = vmatprep.subr.bf16.mxu1 %v3752_v40  ;;  %v4225_v28 = vpack.c.bf16 %v379_v26, %v378_v25  ;;  %v3757_v40 = vld [vmem:[#allocation7 + $0x208] sm:$0xff]  }
  0xab   : > { %v742_v25 = vld [vmem:[#allocation2 + $0x38] sm:$0xff] }
  0xac   : > { %1870 = vmatmul.mubr.bf16.gmra.mrb[24].mxu1 %v4168_v32  ;;  %v773_v26 = vpack.c.bf16 %v742_v25, %v741_v24 }
  0xad   : > { %1877 = vmatprep.mubr.bf16.mxu1 %v4143_v52  ;;  %3428 = vmatpush3.bf16.msra.mxu1 %v3753_v44  ;;  %v3760_v44 = vld [vmem:[#allocation7 + $0x210] sm:$0xff]  }
  0xae   : > { %3429 = vmatprep.subr.bf16.mxu1 %v3755_v49  ;;  %1749 = vmatmul.mubr.bf16.gmra.mrb[28].mxu0 %v4179_v46  ;;  %v3763_v49 = vld [vmem:[#allocation7 + $0x218] sm:$0xff]  }
  0xaf   : > { %1756 = vmatprep.mubr.bf16.mxu0 %v4184_v48 }
  0xb1   : > { %3430 = vmatpush3.bf16.msra.mxu1 %v3756_v50 }
  0xb2   : > { %3431 = vmatprep.subr.bf16.mxu1 %v3758_v59  ;;  %v3767_v59 = vld [vmem:[#allocation7 + $0x238] sm:$0xff]  }
  0xb4   : > { %1878 = vmatmul.mubr.bf16.gmra.mrb[28].mxu1 %v4181_v47 }
  0xb5   : > { %1885 = vmatprep.mubr.bf16.mxu1 %v4153_v9  ;;  %3432 = vmatpush3.bf16.msra.mxu1 %v3759_v61  ;;  %v509_v61 = vld [vmem:[#allocation2 + $0x12a] sm:$0xff] }
  0xb6   : > { %1757 = vmatmul.mubr.bf16.gmra.mrb[32].mxu0 %v4191_v55  ;;  %3433 = vmatprep.subr.bf16.mxu1 %v3761_v0 }
  0xb7   : > { %1764 = vmatprep.mubr.bf16.mxu0 %v4196_v63 }
  0xb9   : > { %3434 = vmatpush3.bf16.msra.mxu1 %v3762_v1  ;;  %v510_v1 = vld [vmem:[#allocation2 + $0x13a] sm:$0xff] }
  0xbc   : > { %1886 = vmatmul.mubr.bf16.gmra.mrb[32].mxu1 %v4193_v62 }
  0xbd   : > { %1893 = vmatprep.mubr.bf16.mxu1 %v4166_v29 }
  0xbe   : > { %1765 = vmatmul.mubr.bf16.gmra.mrb[36].mxu0 %v4203_v14 }
  0xbf   : > { %1772 = vmatprep.mubr.bf16.mxu0 %v4208_v16 }
  0xc4   : > { %1894 = vmatmul.mubr.bf16.gmra.mrb[36].mxu1 %v4205_v10 }
  0xc5   : > { %1901 = vmatprep.mubr.bf16.mxu1 %v4179_v46 }
  0xc6   : > { %1773 = vmatmul.mubr.bf16.gmra.mrb[40].mxu0 %v4214_v21 }
  0xc7   : > { %1780 = vmatprep.mubr.bf16.mxu0 %v4219_v23 }
  0xcc   : > { %1902 = vmatmul.mubr.bf16.gmra.mrb[40].mxu1 %v4216_v22 }
  0xcd   : > { %1909 = vmatprep.mubr.bf16.mxu1 %v4191_v55 }
  0xce   : > { %1781 = vmatmul.mubr.bf16.gmra.mrb[44].mxu0 %v4225_v28 }
  0xcf   : > { %2014 = vmatprep.mubr.bf16.mxu0 %v4155_v12  ;;  %v4240_v12 = vpack.c.bf16 %v503_v43, %v502_v41  ;;  %v707_v41 = vld [vmem:[#allocation2 + $0x18a] sm:$0xff] }
  0xd4   : > { %1910 = vmatmul.mubr.bf16.gmra.mrb[44].mxu1 %v4227_v34 }
  0xd5   : > { %1917 = vmatprep.mubr.bf16.mxu1 %v4203_v14 }
  0xd6   : > { %2015 = vmatmul.mubr.bf16.vlgmr.msra.gmra.mrb[48].mxu0 %v4099_v42  ;;  %v504_v42 = vld [vmem:[#allocation2 + $0xf2] sm:$0xff] }
  0xd7   : > { %3556 = vmatpush3.bf16.msra.mxu0 %v4177_v45  ;;  %2022 = vmatprep.mubr.bf16.mxu0 %v4168_v32  ;;  %v505_v45 = vld [vmem:[#allocation2 + $0xfa] sm:$0xff]  ;;  %v3764_v32 = vld [vmem:[#allocation7 + $0x220] sm:$0xff]  }
  0xd8   : > { %3557 = vmatprep.subr.bf16.mxu0 %v3757_v40  ;;  %v4246_v50 = vpack.c.bf16 %v505_v45, %v504_v42 }
  0xdb   : > { %3558 = vmatpush3.bf16.msra.mxu0 %v3757_v40 }
  0xdc   : > { %1918 = vmatmul.mubr.bf16.gmra.mrb[48].mxu1 %v4233_v39  ;;  %3559 = vmatprep.subr.bf16.mxu0 %v3760_v44 }
  0xdd   : > { %1925 = vmatprep.mubr.bf16.mxu1 %v4214_v21 }
  0xde   : > { %2023 = vmatmul.mubr.bf16.gmra.mrb[52].mxu0 %v4111_v60  ;;  %v506_v60 = vld [vmem:[#allocation2 + $0x10a] sm:$0xff] }
  0xdf   : > { %2030 = vmatprep.mubr.bf16.mxu0 %v4181_v47  ;;  %3560 = vmatpush3.bf16.msra.mxu0 %v3760_v44  ;;  %v4252_v57 = vpack.c.bf16 %v507_v53, %v506_v60  ;;  %v870_v44 = vld [vmem:[#allocation2 + $0x3a] sm:$0xff] }
  0xe0   : > { %3561 = vmatprep.subr.bf16.mxu0 %v3763_v49 }
  0xe3   : > { %3562 = vmatpush3.bf16.msra.mxu0 %v3763_v49 }
  0xe4   : > { %1926 = vmatmul.mubr.bf16.gmra.mrb[52].mxu1 %v4240_v12  ;;  %3563 = vmatprep.subr.bf16.mxu0 %v3764_v32 }
  0xe5   : > { %1933 = vmatprep.mubr.bf16.mxu1 %v4225_v28 }
  0xe6   : > { %2031 = vmatmul.mubr.bf16.gmra.mrb[56].mxu0 %v4123_v15 }
  0xe7   : > { %2038 = vmatprep.mubr.bf16.mxu0 %v4193_v62  ;;  %3564 = vmatpush3.bf16.msra.mxu0 %v3764_v32  ;;  %v4321_v32 = vld [vmem:[%s4080_s26 + $0x78] sm:$0xff] }
  0xe8   : > { %3565 = vmatprep.subr.bf16.mxu0 %v3765_v51 }
  0xeb   : > { %3566 = vmatpush3.bf16.msra.mxu0 %v3765_v51 }
  0xec   : > { %1934 = vmatmul.mubr.bf16.gmra.mrb[56].mxu1 %v4246_v50  ;;  %3567 = vmatprep.subr.bf16.mxu0 %v3766_v54 }
  0xed   : > { %1941 = vmatprep.mubr.bf16.mxu1 %v4095_v36  ;;  %v508_v36 = vld [vmem:[#allocation2 + $0x122] sm:$0xff] }
  0xee   : > { %2039 = vmatmul.mubr.bf16.gmra.mrb[60].mxu0 %v4136_v35  ;;  %v4258_v0 = vpack.c.bf16 %v509_v61, %v508_v36 }
  0xef   : > { %2046 = vmatprep.mubr.bf16.mxu0 %v4205_v10  ;;  %3568 = vmatpush3.bf16.msra.mxu0 %v3766_v54 }
  0xf0   : > { %3569 = vmatprep.subr.bf16.mxu0 %v3767_v59 }
  0xf3   : > { %3570 = vmatpush3.bf16.msra.mxu0 %v3767_v59 }
  0xf4   : > { %1942 = vmatmul.mubr.bf16.gmra.mrb[60].mxu1 %v4252_v57 }
  0xf5   : > { %1949 = vmatprep.mubr.bf16.mxu1 %v4106_v56  ;;  %v4264_v56 = vpack.c.bf16 %v511_v2, %v510_v1 }
  0xf6   : > { %2047 = vmatmul.mubr.bf16.gmra.mrb[64].mxu0 %v4147_v58 }
  0xf7   : > { %2054 = vmatprep.mubr.bf16.mxu0 %v4216_v22 }
  0xfc   : > { %1950 = vmatmul.mubr.bf16.gmra.mrb[64].mxu1 %v4258_v0 }
  0xfd   : > { %1957 = vmatprep.mubr.bf16.mxu1 %v4119_v11  ;;  %v4272_v11 = vpack.c.bf16 %v579_v6, %v578_v5 }
  0xfe   : > { %2055 = vmatmul.mubr.bf16.gmra.mrb[68].mxu0 %v4158_v13 }
  0xff   : > { %2062 = vmatprep.mubr.bf16.mxu0 %v4227_v34 }
 0x104   : > { %1958 = vmatmul.mubr.bf16.gmra.mrb[68].mxu1 %v4264_v56 }
 0x105   : > { %1965 = vmatprep.mubr.bf16.mxu1 %v4132_v31  ;;  %v515_v31 = vld [vmem:[#allocation2 + $0x172] sm:$0xff] }
 0x106   : > { %2063 = vmatmul.mubr.bf16.gmra.mrb[72].mxu0 %v4171_v33  ;;  %v4278_v19 = vpack.c.bf16 %v515_v31, %v514_v8 }
 0x107   : > { %2070 = vmatprep.mubr.bf16.mxu0 %v4233_v39 }
 0x10c   : > { %1966 = vmatmul.mubr.bf16.gmra.mrb[72].mxu1 %v4270_v7 }
 0x10d   : > { %1973 = vmatprep.mubr.bf16.mxu1 %v4272_v11 }
 0x10e   : > { %2071 = vmatmul.mubr.bf16.gmra.mrb[76].mxu0 %v4184_v48 }
 0x10f   : > { %2078 = vmatprep.mubr.bf16.mxu0 %v4240_v12 }
 0x114   : > { %1974 = vmatmul.mubr.bf16.gmra.mrb[76].mxu1 %v4278_v19 }
 0x115   : > { %2175 = vmatprep.mubr.bf16.mxu1 %v837_v20 }
 0x116   : > { %2079 = vmatmul.mubr.bf16.gmra.mrb[80].mxu0 %v4196_v63 }
 0x117   : > { %2086 = vmatprep.mubr.bf16.mxu0 %v4246_v50 }
 0x11c   : > { %2176 = vmatmul.mubr.bf16.vlgmr.msra.gmra.mrb[80].mxu1 %v773_v26 }
 0x11d   : > { %2183 = vmatprep.mubr.bf16.mxu1 %v4123_v15  ;;  %v636_v15 = vld [vmem:[#allocation2 + $0x139] sm:$0xff] }
 0x11e   : > { %2087 = vmatmul.mubr.bf16.gmra.mrb[84].mxu0 %v4208_v16 }
 0x11f   : > { %2094 = vmatprep.mubr.bf16.mxu0 %v4252_v57 }
 0x124   : > { %2184 = vmatmul.mubr.bf16.gmra.mrb[84].mxu1 %v4130_v30  ;;  %v637_v30 = vld [vmem:[#allocation2 + $0x141] sm:$0xff] }
 0x125   : > { %2191 = vmatprep.mubr.bf16.mxu1 %v4136_v35  ;;  %v4300_v35 = vpack.c.bf16 %v637_v30, %v636_v15 }
 0x126   : > { %2095 = vmatmul.mubr.bf16.gmra.mrb[88].mxu0 %v4219_v23 }
 0x127   : > { %2102 = vmatprep.mubr.bf16.mxu0 %v4258_v0 }
 0x12c   : > { %2192 = vmatmul.mubr.bf16.gmra.mrb[88].mxu1 %v4143_v52  ;;  %v638_v52 = vld [vmem:[#allocation2 + $0x151] sm:$0xff] }
 0x12d   : > { %2199 = vmatprep.mubr.bf16.mxu1 %v4147_v58  ;;  %v639_v58 = vld [vmem:[#allocation2 + $0x159] sm:$0xff] }
 0x12e   : > { %2103 = vmatmul.mubr.bf16.gmra.mrb[92].mxu0 %v4294_v38  ;;  %v4306_v40 = vpack.c.bf16 %v639_v58, %v638_v52 }
 0x12f   : > { %2110 = vmatprep.mubr.bf16.mxu0 %v4264_v56 }
 0x134   : > { %2200 = vmatmul.mubr.bf16.gmra.mrb[92].mxu1 %v4153_v9  ;;  %v640_v9 = vld [vmem:[#allocation2 + $0x169] sm:$0xff] }
 0x135   : > { %2207 = vmatprep.mubr.bf16.mxu1 %v4158_v13  ;;  %v641_v13 = vld [vmem:[#allocation2 + $0x171] sm:$0xff] }
 0x136   : > { %2111 = vmatmul.mubr.bf16.gmra.mrb[96].mxu0 %v4300_v35  ;;  %v4312_v43 = vpack.c.bf16 %v641_v13, %v640_v9 }
 0x137   : > { %2118 = vmatprep.mubr.bf16.mxu0 %v4270_v7 }
 0x13c   : > { %2208 = vmatmul.mubr.bf16.gmra.mrb[96].mxu1 %v4166_v29  ;;  %v706_v29 = vld [vmem:[#allocation2 + $0x182] sm:$0xff] }
 0x13d   : > { %2215 = vmatprep.mubr.bf16.mxu1 %v4171_v33  ;;  %v4314_v33 = vpack.c.bf16 %v707_v41, %v706_v29 }
 0x13e   : > { %2119 = vmatmul.mubr.bf16.gmra.mrb[100].mxu0 %v4306_v40 }
 0x13f   : > { %2126 = vmatprep.mubr.bf16.mxu0 %v4278_v19 }
 0x144   : > { %2216 = vmatmul.mubr.bf16.gmra.mrb[100].mxu1 %v4179_v46  ;;  %v869_v46 = vld [vmem:[#allocation2 + $0x32] sm:$0xff] }
 0x145   : > { %2223 = vmatprep.mubr.bf16.mxu1 %v4184_v48  ;;  %v901_v59 = vpack.c.bf16 %v870_v44, %v869_v46 }
 0x146   : > { %2127 = vmatmul.mubr.bf16.gmra.mrb[104].mxu0 %v4312_v43 }
 0x147   : > { %2134 = vmatprep.mubr.bf16.mxu0 %v4314_v33 }
 0x149   : > { %v3099_v49 = vpop.f32.mrb[0].mxu0 }
 0x14a   : > { %v3100_v45 = vpop.f32.mrb[1].mxu0 }
 0x14b   : > { %v4325_v53 = vadd.f32 %v3100_v45, %v3099_v49  ;;  %v3102_v54 = vpop.f32.mrb[2].mxu0 }
 0x14c   : > { %2224 = vmatmul.mubr.bf16.gmra.mrb[104].mxu1 %v4191_v55  ;;  %v3103_v36 = vpop.f32.mrb[3].mxu0 }
 0x14d   : > { %2231 = vmatprep.mubr.bf16.mxu1 %v4196_v63  ;;  %v4329_v63 = vadd.f32 %v3103_v36, %v3102_v54 }
 0x14e   : > { %2135 = vmatmul.mubr.bf16.gmra.mrb[108].mxu0 %v4321_v32 }
 0x14f   : > { %v3171_v48 = vpop.f32.mrb[0].mxu1  ;;  %3571 = vmatprep.mubr.bf16.mxu0 %v901_v59 }
 0x150   : > { %v3172_v42 = vpop.f32.mrb[1].mxu1 }
 0x151   : > { %v4323_v51 = vadd.f32 %v3172_v42, %v3171_v48  ;;  %v3174_v60 = vpop.f32.mrb[2].mxu1  ;;  %v3105_v2 = vpop.f32.mrb[4].mxu0 }
 0x152   : > { %v3175_v55 = vpop.f32.mrb[3].mxu1  ;;  %v3106_v4 = vpop.f32.mrb[5].mxu0 }
 0x153   : > { %v4327_v61 = vadd.f32 %v3175_v55, %v3174_v60  ;;  %v4336_v8 = vadd.f32 %v3106_v4, %v3105_v2  ;;  %v3108_v31 = vpop.f32.mrb[6].mxu0  ;;  %v764_v60 = vld [vmem:[#allocation2 + $0x140] sm:$0xff] }
 0x154   : > { %2232 = vmatmul.mubr.bf16.gmra.mrb[108].mxu1 %v4203_v14  ;;  %v3109_v18 = vpop.f32.mrb[7].mxu0  ;;  %v4372_v55 = vld [vmem:[%s4801_s2] ss:$0 sm:$0xff] }
 0x155   : > { %2239 = vmatprep.mubr.bf16.mxu1 %v4208_v16  ;;  %v4340_v24 = vadd.f32 %v3109_v18, %v3108_v31 }
 0x156   : > { %3572 = vmatmul.mubr.bf16.vlgmr.msra.gmra.mrb[112].mxu0 %v4181_v47  ;;  %v761_v47 = vld [vmem:[#allocation2 + $0x120] sm:$0xff] }
 0x157   : > { %v3177_v1 = vpop.f32.mrb[4].mxu1  ;;  %3575 = vmatprep.mubr.bf16.mxu0 %v4193_v62  ;;  %v762_v62 = vld [vmem:[#allocation2 + $0x128] sm:$0xff] }
 0x158   : > { %v3178_v3 = vpop.f32.mrb[5].mxu1  ;;  %v783_v46 = vpack.c.bf16 %v762_v62, %v761_v47  ;;  %v1703_v47 = vadd.f32 %v4336_v8, %v4372_v55  ;;  %v767_v8 = vld [vmem:[#allocation2 + $0x168] sm:$0xff] }
 0x159   : > { %v4334_v5 = vadd.f32 %v3178_v3, %v3177_v1  ;;  %v3180_v6 = vpop.f32.mrb[6].mxu1  ;;  %v3111_v16 = vpop.f32.mrb[8].mxu0  ;;  %v1695_v3 = vadd.f32 %v4325_v53, %v4372_v55  ;;  %v765_v53 = vld [vmem:[#allocation2 + $0x150] sm:$0xff] }
 0x15a   : > { %v3181_v17 = vpop.f32.mrb[7].mxu1  ;;  %v3112_v26 = vpop.f32.mrb[9].mxu0 }
 0x15b   : > { %v4338_v20 = vadd.f32 %v3181_v17, %v3180_v6  ;;  %v4348_v15 = vadd.f32 %v3112_v26, %v3111_v16  ;;  %v3114_v30 = vpop.f32.mrb[10].mxu0  ;;  %v1698_v17 = vadd.f32 %v4329_v63, %v4372_v55  ;;  %v766_v26 = vld [vmem:[#allocation2 + $0x158] sm:$0xff] }
 0x15c   : > { %2240 = vmatmul.mubr.bf16.gmra.mrb[112].mxu1 %v4214_v21  ;;  %v3115_v58 = vpop.f32.mrb[11].mxu0 }
 0x15d   : > { %2247 = vmatprep.mubr.bf16.mxu1 %v4219_v23  ;;  %v4352_v21 = vadd.f32 %v3115_v58, %v3114_v30  ;;  %v785_v58 = vpack.c.bf16 %v766_v26, %v765_v53 }
 0x15e   : > { %3576 = vmatmul.mubr.bf16.gmra.mrb[116].mxu0 %v4205_v10 }
 0x15f   : > { %v3183_v14 = vpop.f32.mrb[8].mxu1  ;;  %3579 = vmatprep.mubr.bf16.mxu0 %v4216_v22  ;;  %v763_v22 = vld [vmem:[#allocation2 + $0x138] sm:$0xff] }
 0x160   : > { %v3184_v25 = vpop.f32.mrb[9].mxu1  ;;  %v784_v2 = vpack.c.bf16 %v764_v60, %v763_v22 }
 0x161   : > { %v4346_v27 = vadd.f32 %v3184_v25, %v3183_v14  ;;  %v3186_v37 = vpop.f32.mrb[10].mxu1  ;;  %v3117_v13 = vpop.f32.mrb[12].mxu0 }
 0x162   : > { %v3187_v52 = vpop.f32.mrb[11].mxu1  ;;  %v3118_v41 = vpop.f32.mrb[13].mxu0 }
 0x163   : > { %v4350_v9 = vadd.f32 %v3187_v52, %v3186_v37  ;;  %v4360_v49 = vadd.f32 %v3118_v41, %v3117_v13  ;;  %v3120_v42 = vpop.f32.mrb[14].mxu0 }
 0x164   : > { %2248 = vmatmul.mubr.bf16.gmra.mrb[116].mxu1 %v4225_v28  ;;  %v3121_v45 = vpop.f32.mrb[15].mxu0 }
 0x165   : > { %2255 = vmatprep.mubr.bf16.mxu1 %v4294_v38  ;;  %v4364_v38 = vadd.f32 %v3121_v45, %v3120_v42  ;;  %v1719_v26 = vadd.f32 %v4360_v49, %v4372_v55 }
 0x166   : > { %3580 = vmatmul.mubr.bf16.gmra.mrb[120].mxu0 %v4227_v34 }
 0x167   : > { %v3189_v23 = vpop.f32.mrb[12].mxu1  ;;  %3583 = vmatprep.mubr.bf16.mxu0 %v4233_v39 }
 0x168   : > { %v3190_v29 = vpop.f32.mrb[13].mxu1 }
 0x169   : > { %v4358_v44 = vadd.f32 %v3190_v29, %v3189_v23  ;;  %v3192_v48 = vpop.f32.mrb[14].mxu1  ;;  %v3123_v59 = vpop.f32.mrb[16].mxu0 }
 0x16a   : > { %v3193_v28 = vpop.f32.mrb[15].mxu1  ;;  %v3124_v1 = vpop.f32.mrb[17].mxu0 }
 0x16b   : > { %v4362_v10 = vadd.f32 %v3193_v28, %v3192_v48  ;;  %v3126_v39 = vpop.f32.mrb[18].mxu0  ;;  %v768_v28 = vld [vmem:[#allocation2 + $0x170] sm:$0xff] }
 0x16c   : > { %2256 = vmatmul.mubr.bf16.gmra.mrb[120].mxu1 %v783_v46  ;;  %v3127_v31 = vpop.f32.mrb[19].mxu0 }
 0x16d   : > { %2263 = vmatprep.mubr.bf16.mxu1 %v4300_v35  ;;  %v4376_v35 = vadd.f32 %v3124_v1, %v3123_v59  ;;  %v4382_v16 = vadd.f32 %v3127_v31, %v3126_v39  ;;  %v1711_v59 = vadd.f32 %v4348_v15, %v4372_v55  ;;  %v835_v15 = vld [vmem:[#allocation2 + $0x199] sm:$0xff]  ;;  %v836_v31 = vld [vmem:[#allocation2 + $0x1a1] sm:$0xff] }
 0x16e   : > { %3584 = vmatmul.mubr.bf16.gmra.mrb[124].mxu0 %v4240_v12 }
 0x16f   : > { %v3211_v54 = vpop.f32.mrb[16].mxu1  ;;  %3587 = vmatprep.mubr.bf16.mxu0 %v4246_v50  ;;  %v1706_v50 = vadd.f32 %v4340_v24, %v4372_v55 }
 0x170   : > { %v3212_v36 = vpop.f32.mrb[17].mxu1 }
 0x171   : > { %v3213_v34 = vadd.f32 %v3212_v36, %v3211_v54  ;;  %v3214_v4 = vpop.f32.mrb[18].mxu1  ;;  %v3129_v30 = vpop.f32.mrb[20].mxu0  ;;  %v786_v54 = vpack.c.bf16 %v768_v28, %v767_v8  ;;  %v3769_v8 = vld [vmem:[#allocation2] sm:$0xff] }
 0x172   : > { %v3215_v6 = vpop.f32.mrb[19].mxu1  ;;  %v3130_v63 = vpop.f32.mrb[21].mxu0  ;;  %v788_v28 = vpack.c.bf16 %v3769_v8, %v3769_v8 }
 0x173   : > { %v4380_v18 = vadd.f32 %v3213_v34, %v1695_v3  ;;  %v3216_v14 = vadd.f32 %v3215_v6, %v3214_v4  ;;  %v4391_v13 = vadd.f32 %v3130_v63, %v3129_v30  ;;  %v3132_v12 = vpop.f32.mrb[22].mxu0  ;;  %v852_v63 = vpack.c.bf16 %v836_v31, %v835_v15 }
 0x174   : > { %2264 = vmatmul.mubr.bf16.gmra.mrb[124].mxu1 %v784_v2  ;;  %v3133_v41 = vpop.f32.mrb[23].mxu0 }
 0x175   : > { %v4385_v25 = vadd.f32 %v3216_v14, %v1698_v17  ;;  %2271 = vmatprep.mubr.bf16.mxu1 %v4306_v40  ;;  %v4397_v48 = vadd.f32 %v3133_v41, %v3132_v12  ;;  %v899_v12 = vld [vmem:[#allocation2 + $0x19a] sm:$0xff]  ;;  %v1735_v15 = vadd.f32 %v4391_v13, %v4372_v55 }
 0x176   : > { %3588 = vmatmul.mubr.bf16.gmra.mrb[128].mxu0 %v4252_v57 }
 0x177   : > { %v3217_v37 = vpop.f32.mrb[20].mxu1  ;;  %3591 = vmatprep.mubr.bf16.mxu0 %v4258_v0  ;;  %v1714_v0 = vadd.f32 %v4352_v21, %v4372_v55 }
 0x178   : > { %v3218_v52 = vpop.f32.mrb[21].mxu1 }
 0x179   : > { %v3219_v62 = vadd.f32 %v3218_v52, %v3217_v37  ;;  %v3220_v23 = vpop.f32.mrb[22].mxu1  ;;  %v3135_v22 = vpop.f32.mrb[24].mxu0 }
 0x17a   : > { %v3221_v29 = vpop.f32.mrb[23].mxu1  ;;  %v3136_v24 = vpop.f32.mrb[25].mxu0 }
 0x17b   : > { %v4395_v40 = vadd.f32 %v3219_v62, %v1703_v47  ;;  %v3222_v46 = vadd.f32 %v3221_v29, %v3220_v23  ;;  %v4406_v2 = vadd.f32 %v3136_v24, %v3135_v22  ;;  %v3138_v57 = vpop.f32.mrb[26].mxu0  ;;  %v900_v29 = vld [vmem:[#allocation2 + $0x1a2] sm:$0xff]  ;;  %v1727_v22 = vadd.f32 %v4376_v35, %v4372_v55 }
 0x17c   : > { %2272 = vmatmul.mubr.bf16.gmra.mrb[128].mxu1 %v785_v58  ;;  %v3139_v34 = vpop.f32.mrb[27].mxu0 }
 0x17d   : > { %v4400_v42 = vadd.f32 %v3222_v46, %v1706_v50  ;;  %2279 = vmatprep.mubr.bf16.mxu1 %v4312_v43  ;;  %v4412_v39 = vadd.f32 %v3139_v34, %v3138_v57 }
 0x17e   : > { %3592 = vmatmul.mubr.bf16.gmra.mrb[132].mxu0 %v4264_v56 }
 0x17f   : > { %v3223_v45 = vpop.f32.mrb[24].mxu1  ;;  %3595 = vmatprep.mubr.bf16.mxu0 %v4270_v7  ;;  %v1722_v7 = vadd.f32 %v4364_v38, %v4372_v55 }
 0x180   : > { %v3224_v60 = vpop.f32.mrb[25].mxu1 }
 0x181   : > { %v3225_v36 = vadd.f32 %v3224_v60, %v3223_v45  ;;  %v3226_v1 = vpop.f32.mrb[26].mxu1  ;;  %v3141_v14 = vpop.f32.mrb[28].mxu0  ;;  %v916_v45 = vpack.c.bf16 %v900_v29, %v899_v12 }
 0x182   : > { %v3227_v3 = vpop.f32.mrb[27].mxu1  ;;  %v3142_v21 = vpop.f32.mrb[29].mxu0 }
 0x183   : > { %v4410_v43 = vadd.f32 %v3225_v36, %v1711_v59  ;;  %v3228_v4 = vadd.f32 %v3227_v3, %v3226_v1  ;;  %v4421_v52 = vadd.f32 %v3142_v21, %v3141_v14  ;;  %v3144_v56 = vpop.f32.mrb[30].mxu0 }
 0x184   : > { %2280 = vmatmul.mubr.bf16.gmra.mrb[132].mxu1 %v786_v54  ;;  %v3145_v47 = vpop.f32.mrb[31].mxu0 }
 0x185   : > { %v4415_v6 = vadd.f32 %v3228_v4, %v1714_v0  ;;  %2287 = vmatprep.mubr.bf16.mxu1 %v4321_v32  ;;  %v4427_v23 = vadd.f32 %v3145_v47, %v3144_v56 }
 0x186   : > { %3596 = vmatmul.mubr.bf16.gmra.mrb[136].mxu0 %v4278_v19 }
 0x187   : > { %v3229_v17 = vpop.f32.mrb[28].mxu1  ;;  %3599 = vmatprep.mubr.bf16.mxu0 %v4314_v33  ;;  %v1730_v33 = vadd.f32 %v4382_v16, %v4372_v55 }
 0x188   : > { %v3230_v53 = vpop.f32.mrb[29].mxu1 }
 0x189   : > { %v3231_v37 = vadd.f32 %v3230_v53, %v3229_v17  ;;  %v3232_v30 = vpop.f32.mrb[30].mxu1  ;;  %v3147_v50 = vpop.f32.mrb[32].mxu0 }
 0x18a   : > { %v3233_v58 = vpop.f32.mrb[31].mxu1  ;;  %v3148_v38 = vpop.f32.mrb[33].mxu0 }
 0x18b   : > { %v4425_v32 = vadd.f32 %v3231_v37, %v1719_v26  ;;  %v3234_v62 = vadd.f32 %v3233_v58, %v3232_v30  ;;  %v4436_v19 = vadd.f32 %v3148_v38, %v3147_v50  ;;  %v3150_v24 = vpop.f32.mrb[34].mxu0  ;;  %v1738_v26 = vadd.f32 %v4397_v48, %v4372_v55 }
 0x18c   : > { %2288 = vmatmul.mubr.bf16.gmra.mrb[136].mxu1 %v4272_v11  ;;  %v3151_v59 = vpop.f32.mrb[35].mxu0  ;;  %v1746_v38 = vadd.f32 %v4412_v39, %v4372_v55 }
 0x18d   : > { %v4431_v49 = vadd.f32 %v3234_v62, %v1722_v7  ;;  %2295 = vmatprep.mubr.bf16.mxu1 %v852_v63  ;;  %v3152_v57 = vadd.f32 %v3151_v59, %v3150_v24  ;;  %v1743_v62 = vadd.f32 %v4406_v2, %v4372_v55 }
 0x18e   : > { %3600 = vmatmul.mubr.bf16.gmra.mrb[140].mxu0 %v916_v45 }
 0x18f   : > { %v3235_v41 = vpop.f32.mrb[32].mxu1 }
 0x190   : > { %v3236_v46 = vpop.f32.mrb[33].mxu1 }
 0x191   : > { %v3237_v11 = vadd.f32 %v3236_v46, %v3235_v41  ;;  %v3238_v60 = vpop.f32.mrb[34].mxu1  ;;  %v3153_v35 = vpop.f32.mrb[36].mxu0 }
 0x192   : > { %v3239_v54 = vpop.f32.mrb[35].mxu1  ;;  %v3154_v4 = vpop.f32.mrb[37].mxu0 }
 0x193   : > { %v4440_v36 = vadd.f32 %v3237_v11, %v1727_v22  ;;  %v3240_v1 = vadd.f32 %v3239_v54, %v3238_v60  ;;  %v4446_v14 = vadd.f32 %v3154_v4, %v3153_v35  ;;  %v3156_v16 = vpop.f32.mrb[38].mxu0  ;;  %v1751_v54 = vadd.f32 %v4421_v52, %v4372_v55 }
 0x194   : > { %2296 = vmatmul.mubr.bf16.gmra.mrb[140].mxu1 %v788_v28  ;;  %v3157_v21 = vpop.f32.mrb[39].mxu0 }
 0x195   : > { %v4442_v3 = vadd.f32 %v3240_v1, %v1730_v33  ;;  %v3158_v56 = vadd.f32 %v3157_v21, %v3156_v16 }
 0x197   : > { %v3241_v34 = vpop.f32.mrb[36].mxu1 }
 0x198   : > { %v3242_v0 = vpop.f32.mrb[37].mxu1 }
 0x199   : > { %v3243_v31 = vadd.f32 %v3242_v0, %v3241_v34  ;;  %v3244_v17 = vpop.f32.mrb[38].mxu1  ;;  %v3159_v47 = vpop.f32.mrb[40].mxu0  ;;  %v1754_v0 = vadd.f32 %v4427_v23, %v4372_v55  ;;  %v1762_v23 = vadd.f32 %v3152_v57, %v4372_v55  ;;  %v1767_v57 = vadd.f32 %v4446_v14, %v4372_v55 }
 0x19a   : > { %v3245_v53 = vpop.f32.mrb[39].mxu1  ;;  %v3160_v13 = vpop.f32.mrb[41].mxu0 }
 0x19b   : > { %v4450_v37 = vadd.f32 %v3243_v31, %v1735_v15  ;;  %v3246_v30 = vadd.f32 %v3245_v53, %v3244_v17  ;;  %v4456_v41 = vadd.f32 %v3160_v13, %v3159_v47  ;;  %v3162_v50 = vpop.f32.mrb[42].mxu0 }
 0x19c   : > { %v3163_v48 = vpop.f32.mrb[43].mxu0 }
 0x19d   : > { %v4452_v63 = vadd.f32 %v3246_v30, %v1738_v26  ;;  %v4462_v45 = vadd.f32 %v3163_v48, %v3162_v50  ;;  %v1759_v26 = vadd.f32 %v4436_v19, %v4372_v55 }
 0x19f   : > { %v3247_v58 = vpop.f32.mrb[40].mxu1 }
 0x1a0   : > { %v3248_v7 = vpop.f32.mrb[41].mxu1 }
 0x1a1   : > { %v3249_v12 = vadd.f32 %v3248_v7, %v3247_v58  ;;  %v3250_v29 = vpop.f32.mrb[42].mxu1  ;;  %v3165_v60 = vpop.f32.mrb[44].mxu0 }
 0x1a2   : > { %v3251_v46 = vpop.f32.mrb[43].mxu1  ;;  %v3166_v24 = vpop.f32.mrb[45].mxu0 }
 0x1a3   : > { %v4460_v8 = vadd.f32 %v3249_v12, %v1743_v62  ;;  %v3252_v28 = vadd.f32 %v3251_v46, %v3250_v29  ;;  %v4468_v1 = vadd.f32 %v3166_v24, %v3165_v60  ;;  %v3168_v34 = vpop.f32.mrb[46].mxu0 }
 0x1a4   : > { %v3169_v35 = vpop.f32.mrb[47].mxu0 }
 0x1a5   : > { %v4464_v22 = vadd.f32 %v3252_v28, %v1746_v38  ;;  %v4474_v31 = vadd.f32 %v3169_v35, %v3168_v34 }
 0x1a7   : > { %v3253_v11 = vpop.f32.mrb[44].mxu1 }
 0x1a8   : > { %v3254_v2 = vpop.f32.mrb[45].mxu1 }
 0x1a9   : > { %v3255_v59 = vadd.f32 %v3254_v2, %v3253_v11  ;;  %v3256_v33 = vpop.f32.mrb[46].mxu1  ;;  %v3323_v53 = vpop.f32.mrb[48].mxu0 }
 0x1aa   : > { %v3257_v39 = vpop.f32.mrb[47].mxu1  ;;  %v3324_v21 = vpop.f32.mrb[49].mxu0 }
 0x1ab   : > { %v4472_v4 = vadd.f32 %v3255_v59, %v1751_v54  ;;  %v3258_v15 = vadd.f32 %v3257_v39, %v3256_v33  ;;  %v3325_v58 = vadd.f32 %v3324_v21, %v3323_v53  ;;  %v3326_v7 = vpop.f32.mrb[50].mxu0 }
 0x1ac   : > { %v3327_v62 = vpop.f32.mrb[51].mxu0 }
 0x1ad   : > { %v4476_v17 = vadd.f32 %v3258_v15, %v1754_v0  ;;  %v4484_v29 = vadd.f32 %v3325_v58, %v4380_v18  ;;  %v3328_v46 = vadd.f32 %v3327_v62, %v3326_v7  ;;  %v1770_v18 = vadd.f32 %v3158_v56, %v4372_v55 }
 0x1ae   : > { %v1775_v56 = vadd.f32 %v4456_v41, %v4372_v55 }
 0x1af   : > { %v3259_v16 = vpop.f32.mrb[48].mxu1  ;;  %v4489_v38 = vadd.f32 %v3328_v46, %v4385_v25 }
 0x1b0   : > { %v3260_v52 = vpop.f32.mrb[49].mxu1 }
 0x1b1   : > { %v3261_v30 = vadd.f32 %v3260_v52, %v3259_v16  ;;  %v3262_v47 = vpop.f32.mrb[50].mxu1  ;;  %v3329_v28 = vpop.f32.mrb[52].mxu0 }
 0x1b2   : > { %v3263_v13 = vpop.f32.mrb[51].mxu1  ;;  %v3330_v60 = vpop.f32.mrb[53].mxu0 }
 0x1b3   : > { %v4481_v12 = vadd.f32 %v3261_v30, %v1759_v26  ;;  %v3264_v50 = vadd.f32 %v3263_v13, %v3262_v47  ;;  %v3331_v24 = vadd.f32 %v3330_v60, %v3329_v28  ;;  %v3332_v59 = vpop.f32.mrb[54].mxu0 }
 0x1b4   : > { %v3333_v34 = vpop.f32.mrb[55].mxu0 }
 0x1b5   : > { %v4486_v48 = vadd.f32 %v3264_v50, %v1762_v23  ;;  %v4497_v25 = vadd.f32 %v3331_v24, %v4395_v40  ;;  %v3334_v0 = vadd.f32 %v3333_v34, %v3332_v59  ;;  %v1778_v40 = vadd.f32 %v4462_v45, %v4372_v55 }
 0x1b6   : > { %v1783_v45 = vadd.f32 %v4468_v1, %v4372_v55 }
 0x1b7   : > { %v3265_v19 = vpop.f32.mrb[52].mxu1  ;;  %v4502_v16 = vadd.f32 %v3334_v0, %v4400_v42 }
 0x1b8   : > { %v3266_v11 = vpop.f32.mrb[53].mxu1 }
 0x1b9   : > { %v3267_v2 = vadd.f32 %v3266_v11, %v3265_v19  ;;  %v3268_v54 = vpop.f32.mrb[54].mxu1  ;;  %v3335_v53 = vpop.f32.mrb[56].mxu0 }
 0x1ba   : > { %v3269_v33 = vpop.f32.mrb[55].mxu1  ;;  %v3336_v21 = vpop.f32.mrb[57].mxu0 }
 0x1bb   : > { %v4494_v39 = vadd.f32 %v3267_v2, %v1767_v57  ;;  %v3270_v35 = vadd.f32 %v3269_v33, %v3268_v54  ;;  %v3337_v30 = vadd.f32 %v3336_v21, %v3335_v53  ;;  %v3338_v47 = vpop.f32.mrb[58].mxu0 }
 0x1bc   : > { %v3339_v23 = vpop.f32.mrb[59].mxu0 }
 0x1bd   : > { %v4499_v15 = vadd.f32 %v3270_v35, %v1770_v18  ;;  %v4511_v42 = vadd.f32 %v3337_v30, %v4410_v43  ;;  %v3340_v50 = vadd.f32 %v3339_v23, %v3338_v47  ;;  %v1786_v43 = vadd.f32 %v4474_v31, %v4372_v55 }
 0x1be   : > { %v1791_v31 = vadd.f32 %v4323_v51, %v4372_v55 }
 0x1bf   : > { %v3271_v14 = vpop.f32.mrb[56].mxu1  ;;  %v4516_v41 = vadd.f32 %v3340_v50, %v4415_v6 }
 0x1c0   : > { %v3272_v52 = vpop.f32.mrb[57].mxu1 }
 0x1c1   : > { %v3273_v26 = vadd.f32 %v3272_v52, %v3271_v14  ;;  %v3274_v58 = vpop.f32.mrb[58].mxu1  ;;  %v3341_v28 = vpop.f32.mrb[60].mxu0 }
 0x1c2   : > { %v3275_v7 = vpop.f32.mrb[59].mxu1  ;;  %v3342_v60 = vpop.f32.mrb[61].mxu0 }
 0x1c3   : > { %v4508_v13 = vadd.f32 %v3273_v26, %v1775_v56  ;;  %v3276_v62 = vadd.f32 %v3275_v7, %v3274_v58  ;;  %v3343_v2 = vadd.f32 %v3342_v60, %v3341_v28  ;;  %v3344_v54 = vpop.f32.mrb[62].mxu0 }
 0x1c4   : > { %v3345_v18 = vpop.f32.mrb[63].mxu0 }
 0x1c5   : > { %v4513_v46 = vadd.f32 %v3276_v62, %v1778_v40  ;;  %v4525_v6 = vadd.f32 %v3343_v2, %v4425_v32  ;;  %v3346_v35 = vadd.f32 %v3345_v18, %v3344_v54  ;;  %v1794_v32 = vadd.f32 %v4327_v61, %v4372_v55 }
 0x1c6   : > { %v1799_v61 = vadd.f32 %v4334_v5, %v4372_v55 }
 0x1c7   : > { %v3277_v19 = vpop.f32.mrb[60].mxu1  ;;  %v4530_v1 = vadd.f32 %v3346_v35, %v4431_v49 }
 0x1c8   : > { %v3278_v11 = vpop.f32.mrb[61].mxu1 }
 0x1c9   : > { %v3279_v57 = vadd.f32 %v3278_v11, %v3277_v19  ;;  %v3280_v24 = vpop.f32.mrb[62].mxu1  ;;  %v3347_v53 = vpop.f32.mrb[64].mxu0 }
 0x1ca   : > { %v3281_v59 = vpop.f32.mrb[63].mxu1  ;;  %v3348_v21 = vpop.f32.mrb[65].mxu0 }
 0x1cb   : > { %v4522_v33 = vadd.f32 %v3279_v57, %v1783_v45  ;;  %v3282_v34 = vadd.f32 %v3281_v59, %v3280_v24  ;;  %v3349_v26 = vadd.f32 %v3348_v21, %v3347_v53  ;;  %v3350_v58 = vpop.f32.mrb[66].mxu0 }
 0x1cc   : > { %v3351_v40 = vpop.f32.mrb[67].mxu0 }
 0x1cd   : > { %v4527_v0 = vadd.f32 %v3282_v34, %v1786_v43  ;;  %v4539_v49 = vadd.f32 %v3349_v26, %v4440_v36  ;;  %v3352_v62 = vadd.f32 %v3351_v40, %v3350_v58  ;;  %v1802_v36 = vadd.f32 %v4338_v20, %v4372_v55 }
 0x1ce   : > { %v1807_v20 = vadd.f32 %v4346_v27, %v4372_v55 }
 0x1cf   : > { %v3283_v14 = vpop.f32.mrb[64].mxu1  ;;  %v4544_v51 = vadd.f32 %v3352_v62, %v4442_v3 }
 0x1d0   : > { %v3284_v52 = vpop.f32.mrb[65].mxu1 }
 0x1d1   : > { %v3285_v56 = vadd.f32 %v3284_v52, %v3283_v14  ;;  %v3286_v30 = vpop.f32.mrb[66].mxu1  ;;  %v3353_v28 = vpop.f32.mrb[68].mxu0 }
 0x1d2   : > { %v3287_v47 = vpop.f32.mrb[67].mxu1  ;;  %v3354_v60 = vpop.f32.mrb[69].mxu0 }
 0x1d3   : > { %v4536_v7 = vadd.f32 %v3285_v56, %v1791_v31  ;;  %v3288_v23 = vadd.f32 %v3287_v47, %v3286_v30  ;;  %v3355_v57 = vadd.f32 %v3354_v60, %v3353_v28  ;;  %v3356_v24 = vpop.f32.mrb[70].mxu0 }
 0x1d4   : > { %v3357_v43 = vpop.f32.mrb[71].mxu0 }
 0x1d5   : > { %v4541_v50 = vadd.f32 %v3288_v23, %v1794_v32  ;;  %v4553_v3 = vadd.f32 %v3355_v57, %v4450_v37  ;;  %v3358_v34 = vadd.f32 %v3357_v43, %v3356_v24  ;;  %v1810_v37 = vadd.f32 %v4350_v9, %v4372_v55 }
 0x1d6   : > { %v1815_v9 = vadd.f32 %v4358_v44, %v4372_v55 }
 0x1d7   : > { %v3289_v19 = vpop.f32.mrb[68].mxu1  ;;  %v4558_v5 = vadd.f32 %v3358_v34, %v4452_v63 }
 0x1d8   : > { %v3290_v11 = vpop.f32.mrb[69].mxu1 }
 0x1d9   : > { %v3291_v45 = vadd.f32 %v3290_v11, %v3289_v19  ;;  %v3292_v2 = vpop.f32.mrb[70].mxu1  ;;  %v3359_v53 = vpop.f32.mrb[72].mxu0 }
 0x1da   : > { %v3293_v54 = vpop.f32.mrb[71].mxu1  ;;  %v3360_v21 = vpop.f32.mrb[73].mxu0 }
 0x1db   : > { %v4550_v59 = vadd.f32 %v3291_v45, %v1799_v61  ;;  %v3294_v18 = vadd.f32 %v3293_v54, %v3292_v2  ;;  %v3361_v56 = vadd.f32 %v3360_v21, %v3359_v53  ;;  %v3362_v30 = vpop.f32.mrb[74].mxu0 }
 0x1dc   : > { %v3363_v32 = vpop.f32.mrb[75].mxu0 }
 0x1dd   : > { %v4555_v35 = vadd.f32 %v3294_v18, %v1802_v36  ;;  %v4567_v63 = vadd.f32 %v3361_v56, %v4460_v8  ;;  %v3364_v23 = vadd.f32 %v3363_v32, %v3362_v30  ;;  %v1818_v8 = vadd.f32 %v4362_v10, %v4372_v55 }
 0x1df   : > { %v3295_v14 = vpop.f32.mrb[72].mxu1  ;;  %v4572_v27 = vadd.f32 %v3364_v23, %v4464_v22 }
 0x1e0   : > { %v3296_v52 = vpop.f32.mrb[73].mxu1 }
 0x1e1   : > { %v3297_v31 = vadd.f32 %v3296_v52, %v3295_v14  ;;  %v3298_v26 = vpop.f32.mrb[74].mxu1  ;;  %v3365_v28 = vpop.f32.mrb[76].mxu0 }
 0x1e2   : > { %v3299_v58 = vpop.f32.mrb[75].mxu1  ;;  %v3366_v60 = vpop.f32.mrb[77].mxu0 }
 0x1e3   : > { %v4564_v47 = vadd.f32 %v3297_v31, %v1807_v20  ;;  %v3300_v40 = vadd.f32 %v3299_v58, %v3298_v26  ;;  %v3367_v45 = vadd.f32 %v3366_v60, %v3365_v28  ;;  %v3368_v2 = vpop.f32.mrb[78].mxu0 }
 0x1e4   : > { %v3369_v36 = vpop.f32.mrb[79].mxu0 }
 0x1e5   : > { %v4569_v62 = vadd.f32 %v3300_v40, %v1810_v37  ;;  %v4581_v22 = vadd.f32 %v3367_v45, %v4472_v4  ;;  %v3370_v18 = vadd.f32 %v3369_v36, %v3368_v2 }
 0x1e7   : > { %v3301_v19 = vpop.f32.mrb[76].mxu1  ;;  %v4586_v44 = vadd.f32 %v3370_v18, %v4476_v17 }
 0x1e8   : > { %v3302_v11 = vpop.f32.mrb[77].mxu1 }
 0x1e9   : > { %v3303_v61 = vadd.f32 %v3302_v11, %v3301_v19  ;;  %v3304_v57 = vpop.f32.mrb[78].mxu1  ;;  %v3371_v14 = vpop.f32.mrb[80].mxu0 }
 0x1ea   : > { %v3305_v24 = vpop.f32.mrb[79].mxu1  ;;  %v3372_v52 = vpop.f32.mrb[81].mxu0 }
 0x1eb   : > { %v4578_v54 = vadd.f32 %v3303_v61, %v1815_v9  ;;  %v3306_v43 = vadd.f32 %v3305_v24, %v3304_v57  ;;  %v3373_v20 = vadd.f32 %v3372_v52, %v3371_v14  ;;  %v3374_v55 = vpop.f32.mrb[82].mxu0 }
 0x1ec   : > { %v3375_v56 = vpop.f32.mrb[83].mxu0 }
 0x1ed   : > { %v4583_v34 = vadd.f32 %v3306_v43, %v1818_v8  ;;  %v4589_v4 = vadd.f32 %v3373_v20, %v4481_v12  ;;  %v3376_v30 = vadd.f32 %v3375_v56, %v3374_v55 }
 0x1ef   : > { %v3435_v53 = vpop.f32.mrb[80].mxu1  ;;  %v4595_v17 = vadd.f32 %v3376_v30, %v4486_v48 }
 0x1f0   : > { %v3436_v21 = vpop.f32.mrb[81].mxu1 }
 0x1f1   : > { %v3437_v10 = vadd.f32 %v3436_v21, %v3435_v53  ;;  %v3438_v31 = vpop.f32.mrb[82].mxu1  ;;  %v3377_v40 = vpop.f32.mrb[84].mxu0 }
 0x1f2   : > { %v3439_v26 = vpop.f32.mrb[83].mxu1  ;;  %v3378_v19 = vpop.f32.mrb[85].mxu0 }
 0x1f3   : > { %v3440_v37 = vadd.f32 %v3439_v26, %v3438_v31  ;;  %v4592_v58 = vadd.f32 %v3437_v10, %v4484_v29  ;;  %v3379_v11 = vadd.f32 %v3378_v19, %v3377_v40  ;;  %v3380_v9 = vpop.f32.mrb[86].mxu0 }
 0x1f4   : > { %v3381_v61 = vpop.f32.mrb[87].mxu0 }
 0x1f5   : > { %v4598_v32 = vadd.f32 %v3440_v37, %v4489_v38  ;;  %v4601_v57 = vadd.f32 %v3379_v11, %v4494_v39  ;;  %v3382_v29 = vadd.f32 %v3381_v61, %v3380_v9 }
 0x1f7   : > { %v3441_v23 = vpop.f32.mrb[84].mxu1  ;;  %v4607_v38 = vadd.f32 %v3382_v29, %v4499_v15 }
 0x1f8   : > { %v3442_v28 = vpop.f32.mrb[85].mxu1 }
 0x1f9   : > { %v3443_v60 = vadd.f32 %v3442_v28, %v3441_v23  ;;  %v3444_v12 = vpop.f32.mrb[86].mxu1  ;;  %v3383_v24 = vpop.f32.mrb[88].mxu0 }
 0x1fa   : > { %v3445_v45 = vpop.f32.mrb[87].mxu1  ;;  %v3384_v43 = vpop.f32.mrb[89].mxu0 }
 0x1fb   : > { %v3446_v2 = vadd.f32 %v3445_v45, %v3444_v12  ;;  %v4604_v48 = vadd.f32 %v3443_v60, %v4497_v25  ;;  %v3385_v14 = vadd.f32 %v3384_v43, %v3383_v24  ;;  %v3386_v52 = vpop.f32.mrb[90].mxu0 }
 0x1fc   : > { %v3387_v21 = vpop.f32.mrb[91].mxu0 }
 0x1fd   : > { %v4610_v8 = vadd.f32 %v3446_v2, %v4502_v16  ;;  %v4613_v10 = vadd.f32 %v3385_v14, %v4508_v13  ;;  %v3388_v25 = vadd.f32 %v3387_v21, %v3386_v52 }
 0x1ff   : > { %v3447_v36 = vpop.f32.mrb[88].mxu1  ;;  %v4619_v16 = vadd.f32 %v3388_v25, %v4513_v46 }
 0x200   : > { %v3448_v18 = vpop.f32.mrb[89].mxu1 }
 0x201   : > { %v3449_v53 = vadd.f32 %v3448_v18, %v3447_v36  ;;  %v3450_v39 = vpop.f32.mrb[90].mxu1  ;;  %v3389_v56 = vpop.f32.mrb[92].mxu0 }
 0x202   : > { %v3451_v20 = vpop.f32.mrb[91].mxu1  ;;  %v3390_v30 = vpop.f32.mrb[93].mxu0 }
 0x203   : > { %v3452_v55 = vadd.f32 %v3451_v20, %v3450_v39  ;;  %v4616_v15 = vadd.f32 %v3449_v53, %v4511_v42  ;;  %v3391_v40 = vadd.f32 %v3390_v30, %v3389_v56  ;;  %v3392_v19 = vpop.f32.mrb[94].mxu0 }
 0x204   : > { %v3393_v28 = vpop.f32.mrb[95].mxu0 }
 0x205   : > { %v4622_v31 = vadd.f32 %v3452_v55, %v4516_v41  ;;  %v4625_v60 = vadd.f32 %v3391_v40, %v4522_v33  ;;  %v3394_v42 = vadd.f32 %v3393_v28, %v3392_v19 }
 0x207   : > { %v3453_v26 = vpop.f32.mrb[92].mxu1  ;;  %v4631_v41 = vadd.f32 %v3394_v42, %v4527_v0 }
 0x208   : > { %v3454_v37 = vpop.f32.mrb[93].mxu1 }
 0x209   : > { %v3455_v23 = vadd.f32 %v3454_v37, %v3453_v26  ;;  %v3456_v13 = vpop.f32.mrb[94].mxu1  ;;  %v3395_v61 = vpop.f32.mrb[96].mxu0 }
 0x20a   : > { %v3457_v11 = vpop.f32.mrb[95].mxu1  ;;  %v3396_v29 = vpop.f32.mrb[97].mxu0 }
 0x20b   : > { %v3458_v9 = vadd.f32 %v3457_v11, %v3456_v13  ;;  %v4628_v46 = vadd.f32 %v3455_v23, %v4525_v6  ;;  %v3397_v24 = vadd.f32 %v3396_v29, %v3395_v61  ;;  %v3398_v43 = vpop.f32.mrb[98].mxu0 }
 0x20c   : > { %v3399_v18 = vpop.f32.mrb[99].mxu0 }
 0x20d   : > { %v4634_v12 = vadd.f32 %v3458_v9, %v4530_v1  ;;  %v4637_v53 = vadd.f32 %v3397_v24, %v4536_v7  ;;  %v3400_v6 = vadd.f32 %v3399_v18, %v3398_v43 }
 0x20f   : > { %v3459_v45 = vpop.f32.mrb[96].mxu1  ;;  %v4643_v1 = vadd.f32 %v3400_v6, %v4541_v50 }
 0x210   : > { %v3460_v2 = vpop.f32.mrb[97].mxu1 }
 0x211   : > { %v3461_v36 = vadd.f32 %v3460_v2, %v3459_v45  ;;  %v3462_v33 = vpop.f32.mrb[98].mxu1  ;;  %v3401_v21 = vpop.f32.mrb[100].mxu0 }
 0x212   : > { %v3463_v14 = vpop.f32.mrb[99].mxu1  ;;  %v3402_v25 = vpop.f32.mrb[101].mxu0 }
 0x213   : > { %v3464_v52 = vadd.f32 %v3463_v14, %v3462_v33  ;;  %v4640_v0 = vadd.f32 %v3461_v36, %v4539_v49  ;;  %v3403_v56 = vadd.f32 %v3402_v25, %v3401_v21  ;;  %v3404_v30 = vpop.f32.mrb[102].mxu0 }
 0x214   : > { %v3405_v37 = vpop.f32.mrb[103].mxu0 }
 0x215   : > { %v4646_v39 = vadd.f32 %v3464_v52, %v4544_v51  ;;  %v4649_v23 = vadd.f32 %v3403_v56, %v4550_v59  ;;  %v3406_v49 = vadd.f32 %v3405_v37, %v3404_v30 }
 0x217   : > { %v3465_v20 = vpop.f32.mrb[100].mxu1  ;;  %v4655_v51 = vadd.f32 %v3406_v49, %v4555_v35 }
 0x218   : > { %v3466_v55 = vpop.f32.mrb[101].mxu1 }
 0x219   : > { %v3467_v26 = vadd.f32 %v3466_v55, %v3465_v20  ;;  %v3468_v7 = vpop.f32.mrb[102].mxu1  ;;  %v3407_v28 = vpop.f32.mrb[104].mxu0 }
 0x21a   : > { %v3469_v40 = vpop.f32.mrb[103].mxu1  ;;  %v3408_v42 = vpop.f32.mrb[105].mxu0 }
 0x21b   : > { %v3470_v19 = vadd.f32 %v3469_v40, %v3468_v7  ;;  %v4652_v50 = vadd.f32 %v3467_v26, %v4553_v3  ;;  %v3409_v61 = vadd.f32 %v3408_v42, %v3407_v28  ;;  %v3410_v29 = vpop.f32.mrb[106].mxu0 }
 0x21c   : > { %v3411_v2 = vpop.f32.mrb[107].mxu0 }
 0x21d   : > { %v4658_v13 = vadd.f32 %v3470_v19, %v4558_v5  ;;  %v4661_v36 = vadd.f32 %v3409_v61, %v4564_v47  ;;  %v3412_v3 = vadd.f32 %v3411_v2, %v3410_v29 }
 0x21f   : > { %v3471_v11 = vpop.f32.mrb[104].mxu1  ;;  %v4667_v5 = vadd.f32 %v3412_v3, %v4569_v62 }
 0x220   : > { %v3472_v9 = vpop.f32.mrb[105].mxu1 }
 0x221   : > { %v3473_v45 = vadd.f32 %v3472_v9, %v3471_v11  ;;  %v3474_v59 = vpop.f32.mrb[106].mxu1  ;;  %v3413_v18 = vpop.f32.mrb[108].mxu0 }
 0x222   : > { %v3475_v24 = vpop.f32.mrb[107].mxu1  ;;  %v3414_v6 = vpop.f32.mrb[109].mxu0 }
 0x223   : > { %v3476_v43 = vadd.f32 %v3475_v24, %v3474_v59  ;;  %v4664_v35 = vadd.f32 %v3473_v45, %v4567_v63  ;;  %v3415_v21 = vadd.f32 %v3414_v6, %v3413_v18  ;;  %v3416_v25 = vpop.f32.mrb[110].mxu0 }
 0x224   : > { %v3417_v55 = vpop.f32.mrb[111].mxu0 }
 0x225   : > { %v4670_v33 = vadd.f32 %v3476_v43, %v4572_v27  ;;  %v4673_v26 = vadd.f32 %v3415_v21, %v4578_v54  ;;  %v3418_v63 = vadd.f32 %v3417_v55, %v3416_v25 }
 0x227   : > { %v3477_v14 = vpop.f32.mrb[108].mxu1  ;;  %v4679_v27 = vadd.f32 %v3418_v63, %v4583_v34 }
 0x228   : > { %v3478_v52 = vpop.f32.mrb[109].mxu1 }
 0x229   : > { %v3479_v20 = vadd.f32 %v3478_v52, %v3477_v14  ;;  %v3480_v47 = vpop.f32.mrb[110].mxu1  ;;  %v3573_v40 = vpop.f32.mrb[112].mxu0 }
 0x22a   : > { %v3481_v56 = vpop.f32.mrb[111].mxu1  ;;  %v2347_v49 = vadd.f32 %v3573_v40, %v4604_v48  ;;  %v2338_v28 = vpop.f32.mrb[113].mxu0 }
 0x22b   : > { %v3482_v30 = vadd.f32 %v3481_v56, %v3480_v47  ;;  %v4676_v62 = vadd.f32 %v3479_v20, %v4581_v22  ;;  %v2339_v54 = vadd.f32 %v2338_v28, %v4592_v58  ;;  %v3574_v9 = vpop.f32.mrb[114].mxu0 }
 0x22c   : > { %v2350_v22 = vadd.f32 %v3574_v9, %v4610_v8  ;;  %v2341_v34 = vpop.f32.mrb[115].mxu0  ;;  %v2467_v59 = vmax.f32 %v2347_v49, 0.0 }
 0x22d   : > { %v4682_v7 = vadd.f32 %v3482_v30, %v4586_v44  ;;  %v2342_v44 = vadd.f32 %v2341_v34, %v4598_v32  ;;  %v2465_v2 = vmax.f32 %v2339_v54, 0.0 }
 0x22e   : > { %v2468_v48 = vmax.f32 %v2350_v22, 0.0 }
 0x22f   : > { %v3483_v37 = vpop.f32.mrb[112].mxu1  ;;  %v2466_v24 = vmax.f32 %v2342_v44, 0.0 }
 0x230   : > { %v3484_v19 = vpop.f32.mrb[113].mxu1  ;;  %v2981_v58 = vpack.c.bf16 %v2468_v48, %v2467_v59 }
 0x231   : > { %v3485_v11 = vadd.f32 %v3484_v19, %v3483_v37  ;;  %v3486_v42 = vpop.f32.mrb[114].mxu1  ;;  %v2976_v43 = vpack.c.bf16 %v2466_v24, %v2465_v2  ;;  %v3577_v14 = vpop.f32.mrb[116].mxu0 }
 0x232   : > { %v3487_v61 = vpop.f32.mrb[115].mxu1  ;;  %3068 = vst [vmem:[%s4696_s8 + $0x8] sm:$0xff] %v2981_v58   ;;  %v2354_v8 = vpop.f32.mrb[117].mxu0 }
 0x233   : > { %v3488_v45 = vadd.f32 %v3487_v61, %v3486_v42  ;;  %v4689_v29 = vadd.f32 %v3485_v11, %v4589_v4  ;;  %v2363_v4 = vadd.f32 %v3577_v14, %v4628_v46  ;;  %2977 = vst [vmem:[%s4696_s8] sm:$0xff] %v2976_v43   ;;  %v2355_v52 = vadd.f32 %v2354_v8, %v4616_v15  ;;  %v3578_v21 = vpop.f32.mrb[118].mxu0 }
 0x234   : > { %v2366_v20 = vadd.f32 %v3578_v21, %v4634_v12  ;;  %v2357_v47 = vpop.f32.mrb[119].mxu0 }
 0x235   : > { %v4692_v3 = vadd.f32 %v3488_v45, %v4595_v17  ;;  %v2358_v56 = vadd.f32 %v2357_v47, %v4622_v31  ;;  %v2471_v46 = vmax.f32 %v2363_v4, 0.0  ;;  %v2469_v37 = vmax.f32 %v2355_v52, 0.0 }
 0x236   : > { %v2472_v30 = vmax.f32 %v2366_v20, 0.0 }
 0x237   : > { %v3489_v18 = vpop.f32.mrb[116].mxu1  ;;  %v2470_v40 = vmax.f32 %v2358_v56, 0.0 }
 0x238   : > { %v3490_v32 = vpop.f32.mrb[117].mxu1  ;;  %v2991_v15 = vpack.c.bf16 %v2472_v30, %v2471_v46 }
 0x239   : > { %v3491_v6 = vadd.f32 %v3490_v32, %v3489_v18  ;;  %v3492_v17 = vpop.f32.mrb[118].mxu1  ;;  %v2986_v19 = vpack.c.bf16 %v2470_v40, %v2469_v37  ;;  %v3581_v11 = vpop.f32.mrb[120].mxu0 }
 0x23a   : > { %v3493_v25 = vpop.f32.mrb[119].mxu1  ;;  %3070 = vst [vmem:[%s4696_s8 + $0x18] sm:$0xff] %v2991_v15   ;;  %v2379_v12 = vadd.f32 %v3581_v11, %v4652_v50  ;;  %v2370_v42 = vpop.f32.mrb[121].mxu0 }
 0x23b   : > { %v3494_v55 = vadd.f32 %v3493_v25, %v3492_v17  ;;  %v2250_v63 = vadd.f32 %v3491_v6, %v4601_v57  ;;  %3069 = vst [vmem:[%s4696_s8 + $0x10] sm:$0xff] %v2986_v19   ;;  %v2371_v31 = vadd.f32 %v2370_v42, %v4640_v0  ;;  %v3582_v22 = vpop.f32.mrb[122].mxu0 }
 0x23c   : > { %v2382_v61 = vadd.f32 %v3582_v22, %v4658_v13  ;;  %v2475_v50 = vmax.f32 %v2379_v12, 0.0 }
 0x23d   : > { %v2253_v49 = vadd.f32 %v3494_v55, %v4607_v38  ;;  %v2373_v38 = vpop.f32.mrb[123].mxu0  ;;  %v2473_v2 = vmax.f32 %v2371_v31, 0.0 }
 0x23e   : > { %v2374_v44 = vadd.f32 %v2373_v38, %v4646_v39  ;;  %v2476_v48 = vmax.f32 %v2382_v61, 0.0 }
 0x23f   : > { %v3495_v28 = vpop.f32.mrb[120].mxu1 }
 0x240   : > { %v3496_v54 = vpop.f32.mrb[121].mxu1  ;;  %v2474_v24 = vmax.f32 %v2374_v44, 0.0  ;;  %v3001_v58 = vpack.c.bf16 %v2476_v48, %v2475_v50 }
 0x241   : > { %v3497_v9 = vadd.f32 %v3496_v54, %v3495_v28  ;;  %v3498_v57 = vpop.f32.mrb[122].mxu1  ;;  %v3585_v13 = vpop.f32.mrb[124].mxu0 }
 0x242   : > { %v3499_v34 = vpop.f32.mrb[123].mxu1  ;;  %v2996_v43 = vpack.c.bf16 %v2474_v24, %v2473_v2  ;;  %3072 = vst [vmem:[%s4696_s8 + $0x28] sm:$0xff] %v3001_v58   ;;  %v2395_v14 = vadd.f32 %v3585_v13, %v4676_v62  ;;  %v2386_v32 = vpop.f32.mrb[125].mxu0 }
 0x243   : > { %v3500_v45 = vadd.f32 %v3499_v34, %v3498_v57  ;;  %v4713_v59 = vadd.f32 %v3497_v9, %v4613_v10  ;;  %v2387_v10 = vadd.f32 %v2386_v32, %v4664_v35  ;;  %v3586_v6 = vpop.f32.mrb[126].mxu0 }
 0x244   : > { %3071 = vst [vmem:[%s4696_s8 + $0x20] sm:$0xff] %v2996_v43   ;;  %v2398_v52 = vadd.f32 %v3586_v6, %v4682_v7  ;;  %v2389_v17 = vpop.f32.mrb[127].mxu0  ;;  %v2479_v62 = vmax.f32 %v2395_v14, 0.0 }
 0x245   : > { %v4716_v0 = vadd.f32 %v3500_v45, %v4619_v16  ;;  %v2390_v20 = vadd.f32 %v2389_v17, %v4670_v33  ;;  %v2477_v55 = vmax.f32 %v2387_v10, 0.0 }
 0x246   : > { %v2480_v47 = vmax.f32 %v2398_v52, 0.0 }
 0x247   : > { %v3501_v18 = vpop.f32.mrb[124].mxu1  ;;  %v2478_v56 = vmax.f32 %v2390_v20, 0.0 }
 0x248   : > { %v3502_v4 = vpop.f32.mrb[125].mxu1  ;;  %v3011_v35 = vpack.c.bf16 %v2480_v47, %v2479_v62 }
 0x249   : > { %v3503_v39 = vadd.f32 %v3502_v4, %v3501_v18  ;;  %v3504_v8 = vpop.f32.mrb[126].mxu1  ;;  %v3006_v30 = vpack.c.bf16 %v2478_v56, %v2477_v55  ;;  %v3589_v40 = vpop.f32.mrb[128].mxu0 }
 0x24a   : > { %v3505_v16 = vpop.f32.mrb[127].mxu1  ;;  %3074 = vst [vmem:[%s4696_s8 + $0x38] sm:$0xff] %v3011_v35   ;;  %v2411_v7 = vadd.f32 %v3589_v40, %v2250_v63  ;;  %v2402_v19 = vpop.f32.mrb[129].mxu0 }
 0x24b   : > { %v3506_v21 = vadd.f32 %v3505_v16, %v3504_v8  ;;  %v2266_v25 = vadd.f32 %v3503_v39, %v4625_v60  ;;  %3073 = vst [vmem:[%s4696_s8 + $0x30] sm:$0xff] %v3006_v30   ;;  %v2403_v33 = vadd.f32 %v2402_v19, %v4689_v29  ;;  %v3590_v60 = vpop.f32.mrb[130].mxu0 }
 0x24c   : > { %v2414_v12 = vadd.f32 %v3590_v60, %v2253_v49  ;;  %v2405_v42 = vpop.f32.mrb[131].mxu0  ;;  %v2483_v57 = vmax.f32 %v2411_v7, 0.0 }
 0x24d   : > { %v2269_v46 = vadd.f32 %v3506_v21, %v4631_v41  ;;  %v2406_v41 = vadd.f32 %v2405_v42, %v4692_v3  ;;  %v2481_v22 = vmax.f32 %v2403_v33, 0.0 }
 0x24e   : > { %v2484_v63 = vmax.f32 %v2414_v12, 0.0 }
 0x24f   : > { %v3507_v37 = vpop.f32.mrb[128].mxu1  ;;  %v2482_v61 = vmax.f32 %v2406_v41, 0.0 }
 0x250   : > { %v3508_v15 = vpop.f32.mrb[129].mxu1  ;;  %v3021_v38 = vpack.c.bf16 %v2484_v63, %v2483_v57 }
 0x251   : > { %v3509_v28 = vadd.f32 %v3508_v15, %v3507_v37  ;;  %v3510_v11 = vpop.f32.mrb[130].mxu1  ;;  %v3016_v29 = vpack.c.bf16 %v2482_v61, %v2481_v22  ;;  %v3593_v44 = vpop.f32.mrb[132].mxu0 }
 0x252   : > { %v3511_v54 = vpop.f32.mrb[131].mxu1  ;;  %3076 = vst [vmem:[%s4696_s8 + $0x48] sm:$0xff] %v3021_v38   ;;  %v2427_v49 = vadd.f32 %v3593_v44, %v2266_v25  ;;  %v2418_v48 = vpop.f32.mrb[133].mxu0 }
 0x253   : > { %v3512_v9 = vadd.f32 %v3511_v54, %v3510_v11  ;;  %v2274_v31 = vadd.f32 %v3509_v28, %v4637_v53  ;;  %3075 = vst [vmem:[%s4696_s8 + $0x40] sm:$0xff] %v3016_v29   ;;  %v2419_v3 = vadd.f32 %v2418_v48, %v4713_v59  ;;  %v3594_v53 = vpop.f32.mrb[134].mxu0 }
 0x254   : > { %v2430_v58 = vadd.f32 %v3594_v53, %v2269_v46  ;;  %v2421_v18 = vpop.f32.mrb[135].mxu0  ;;  %v2487_v4 = vmax.f32 %v2427_v49, 0.0 }
 0x255   : > { %v2277_v34 = vadd.f32 %v3512_v9, %v4643_v1  ;;  %v2422_v1 = vadd.f32 %v2421_v18, %v4716_v0  ;;  %v2485_v39 = vmax.f32 %v2419_v3, 0.0 }
 0x256   : > { %v2488_v32 = vmax.f32 %v2430_v58, 0.0 }
 0x257   : > { %v3513_v45 = vpop.f32.mrb[132].mxu1  ;;  %v2486_v10 = vmax.f32 %v2422_v1, 0.0 }
 0x258   : > { %v3514_v50 = vpop.f32.mrb[133].mxu1  ;;  %v3031_v6 = vpack.c.bf16 %v2488_v32, %v2487_v4 }
 0x259   : > { %v3515_v2 = vadd.f32 %v3514_v50, %v3513_v45  ;;  %v3516_v24 = vpop.f32.mrb[134].mxu1  ;;  %v3026_v59 = vpack.c.bf16 %v2486_v10, %v2485_v39  ;;  %v3597_v16 = vpop.f32.mrb[136].mxu0 }
 0x25a   : > { %v3517_v43 = vpop.f32.mrb[135].mxu1  ;;  %3078 = vst [vmem:[%s4696_s8 + $0x58] sm:$0xff] %v3031_v6   ;;  %v2434_v20 = vpop.f32.mrb[137].mxu0 }
 0x25b   : > { %v3518_v13 = vadd.f32 %v3517_v43, %v3516_v24  ;;  %v2282_v14 = vadd.f32 %v3515_v2, %v4649_v23  ;;  %3077 = vst [vmem:[%s4696_s8 + $0x50] sm:$0xff] %v3026_v59   ;;  %v2435_v62 = vadd.f32 %v2434_v20, %v2274_v31  ;;  %v3598_v47 = vpop.f32.mrb[138].mxu0 }
 0x25c   : > { %v2437_v56 = vpop.f32.mrb[139].mxu0 }
 0x25d   : > { %v2285_v8 = vadd.f32 %v3518_v13, %v4655_v51  ;;  %v2443_v17 = vadd.f32 %v3597_v16, %v2282_v14  ;;  %v2438_v51 = vadd.f32 %v2437_v56, %v2277_v34  ;;  %v2489_v40 = vmax.f32 %v2435_v62, 0.0 }
 0x25f   : > { %v3519_v52 = vpop.f32.mrb[136].mxu1  ;;  %v2446_v23 = vadd.f32 %v3598_v47, %v2285_v8  ;;  %v2491_v30 = vmax.f32 %v2443_v17, 0.0  ;;  %v2490_v7 = vmax.f32 %v2438_v51, 0.0 }
 0x260   : > { %v3520_v21 = vpop.f32.mrb[137].mxu1 }
 0x261   : > { %v3521_v25 = vadd.f32 %v3520_v21, %v3519_v52  ;;  %v3522_v0 = vpop.f32.mrb[138].mxu1  ;;  %v2492_v37 = vmax.f32 %v2446_v23, 0.0  ;;  %v3036_v28 = vpack.c.bf16 %v2490_v7, %v2489_v40  ;;  %v3601_v11 = vpop.f32.mrb[140].mxu0 }
 0x262   : > { %v3523_v55 = vpop.f32.mrb[139].mxu1  ;;  %v2450_v12 = vpop.f32.mrb[141].mxu0 }
 0x263   : > { %v3524_v46 = vadd.f32 %v3523_v55, %v3522_v0  ;;  %v2290_v35 = vadd.f32 %v3521_v25, %v4661_v36  ;;  %v3041_v19 = vpack.c.bf16 %v2492_v37, %v2491_v30  ;;  %3079 = vst [vmem:[%s4696_s8 + $0x60] sm:$0xff] %v3036_v28   ;;  %v3602_v36 = vpop.f32.mrb[142].mxu0 }
 0x264   : > { %v2453_v31 = vpop.f32.mrb[143].mxu0 }
 0x265   : > { %v2293_v15 = vadd.f32 %v3524_v46, %v4667_v5  ;;  %3080 = vst [vmem:[%s4696_s8 + $0x68] sm:$0xff] %v3041_v19   ;;  %v2451_v42 = vadd.f32 %v2450_v12, %v2290_v35 }
 0x267   : > { %v3525_v33 = vpop.f32.mrb[140].mxu1  ;;  %v2454_v63 = vadd.f32 %v2453_v31, %v2293_v15  ;;  %v2493_v61 = vmax.f32 %v2451_v42, 0.0 }
 0x268   : > { %v3526_v60 = vpop.f32.mrb[141].mxu1 }
 0x269   : > { %v3527_v54 = vadd.f32 %v3526_v60, %v3525_v33  ;;  %v3528_v9 = vpop.f32.mrb[142].mxu1  ;;  %v2494_v38 = vmax.f32 %v2454_v63, 0.0 }
 0x26a   : > { %v3529_v41 = vpop.f32.mrb[143].mxu1 }
 0x26b   : > { %v2298_v57 = vadd.f32 %v3527_v54, %v4673_v26  ;;  %v3530_v5 = vadd.f32 %v3529_v41, %v3528_v9  ;;  %v3046_v45 = vpack.c.bf16 %v2494_v38, %v2493_v61 }
 0x26d   : > { %v2459_v22 = vadd.f32 %v3601_v11, %v2298_v57  ;;  %v2301_v34 = vadd.f32 %v3530_v5, %v4679_v27  ;;  %3081 = vst [vmem:[%s4696_s8 + $0x70] sm:$0xff] %v3046_v45  }
 0x26f   : > { %v2462_v29 = vadd.f32 %v3602_v36, %v2301_v34  ;;  %v2495_v44 = vmax.f32 %v2459_v22, 0.0 }
 0x271   : > { %v2496_v49 = vmax.f32 %v2462_v29, 0.0 }
 0x273   : > { %v3051_v26 = vpack.c.bf16 %v2496_v49, %v2495_v44 }
 0x275   : > { %3082 = vst [vmem:[%s4696_s8 + $0x78] sm:$0xff] %v3051_v26  }
 0x276   : > { %3841 = shalt.err (!%p3838_p7)
}
 0x277   : > { %s3842_s30 = scalar_lea.hbm %s4752_s11, 2048  ;;  %s3846_s10 = scalar_lea.hbm %s4802_s3, 4096 }
 0x278   : > { %p3843_p9 = scmp.ne.s32.totalorder %s4752_s11, %s3842_s30  ;;  %p3847_p5 = scmp.lt.u32.totalorder %s4752_s11, %s4802_s3 }
 0x279   : > { %p3848_p11 = scmp.lt.u32.totalorder %s3846_s10, %s3842_s30  ;;  %p3850_p4 = scmp.lt.u32.totalorder %s3842_s30, %s4752_s11 }
 0x27a   : > { %p3844_p1 = pnand %p3843_p9, %p4023_p12 }
 0x27b   : > { %p3849_p2 = por %p3848_p11, %p3847_p5 }
 0x27c   : > { %p3845_p0 = pneg %p3844_p1 }
 0x27d   : > { %p3851_p6 = por %p3850_p4, %p3849_p2 }
 0x27f   : > { %p3852_p8 = pnand %p3851_p6, %p3845_p0 }
 0x281   : > { %3855 = shalt.err (!%p3852_p8)
}
 0x282   : > { %s3907_s20 = smov 64   ;;  %s3908_s8 = smov 4  }
 0x283   : > { %3625 = dma.vmem_to_hbm [thread:$0]  (%p4023_p12), %s4754_s4, 2048, %s4752_s11, %s2658_s27, %s3907_s20, %s3907_s20, %s3908_s8  }
 0x284 PF: > { %s2686_s9 = sand.u32 1, %s3886_s12   ;;  %p4817_p10 = scmp.ne.s32.totalorder %s4807_s19, 0 }
 0x285   : > { %p4818_p13 = scmp.ge.s32.totalorder %s3898_s15, 2  ;;  %s2687_s25 = scalar_lea.sflag [#allocation6], %s2686_s9 }
 0x287   : > { %p3636_p3 = pnand %p4818_p13, %p4817_p10 }
 0x289   : > { %3881 = dma.done.wait (!%p3636_p3), %s2687_s25, 2048  }
 0x28a   : > { %3883 = vsyncadd (!%p3636_p3), %s2687_s25, 4294965248  ;;  %p17_p7 = scmp.ge.s32.totalorder %s3985_s24, 4   ;;  %s4819_s12 = smov %s3890_s13 }
 0x28b   : > { %s4820_s13 = smov %s3894_s14  ;;  %s4821_s14 = smov %s4019_s17 }
 0x28c   : > { %s4822_s15 = smov %s3985_s24  ;;  %19 = sbr.rel (!%p17_p7) target bundleno = 6 (0x6), region = 83 }
 0x293   :  { %2692 = vsyncpa [#allocation5], 1 }
 0x294   :  { %2694 = vsyncpa [#allocation5 + $0x1], 1 }
 0x295   :  { %2695 = vsyncpa [#allocation8], 1 }
 0x296   :  { %2696 = vsyncpa [#allocation6], 1 }
 0x297   :  { %2698 = vsyncpa [#allocation6 + $0x1], 1 }

</bundles_post_ra>
